<compile_context>
chip_gen: v5e
topology: v5e:2x2
jax: 0.10.0
libtpu: 0.0.40
codegen_flags: <defaults>
</compile_context>

<pallas_src>
import jax
import jax.numpy as jnp
from jax import lax
from jax.experimental import pallas as pl
from jax.experimental.pallas import tpu as pltpu


def _make_conv_relu_kernel(tap_offsets):
    """tap_offsets: static flat-index offsets of the 27 taps (kd, kh, kw order)."""

    def kernel(x_ref, halo_ref, w_ref, b_ref, o_ref):
        # x_ref:    (C_in, TM)          bf16  current flat-M tile of padded input
        # halo_ref: (C_in, HALO)        bf16  next HALO columns (tap halo)
        # w_ref:    (27, C_out, C_in)   bf16  per-tap weight matrices (resident)
        # b_ref:    (C_out, 1)          f32   bias (resident)
        # o_ref:    (C_out, TM)         f32   lane-dense output slab
        tile_m = o_ref.shape[1]
        x_ext = jnp.concatenate([x_ref[...], halo_ref[...]], axis=1)  # (C_in, TM+HALO)

        acc = jnp.zeros(o_ref.shape, jnp.float32)
        for t, off in enumerate(tap_offsets):            # 27 static taps, unrolled
            acc = acc + jnp.dot(w_ref[t], x_ext[:, off:off + tile_m],
                                preferred_element_type=jnp.float32)
        acc = acc + b_ref[...]
        o_ref[...] = jnp.maximum(acc, 0.0).astype(o_ref.dtype)

    return kernel


def base_conv_forward(x, weight, bias, *, ksize=3, block_m=4096,
                      compute_dtype=jnp.bfloat16):
    """x: (N, C_in, D, H, W); weight: (C_out, C_in, k, k, k); bias: (C_out,)."""
    N, C_in, D, H, W = x.shape
    C_out = weight.shape[0]
    pad = (ksize - 1) // 2
    Dp, Hp, Wp = D + 2 * pad, H + 2 * pad, W + 2 * pad

    # ---- layout glue (cheap, ~1x input size): zero-pad + flatten; batch stays leading ----
    xp = jnp.pad(x, ((0, 0), (0, 0), (pad, pad), (pad, pad), (pad, pad)))
    M0 = Dp * Hp * Wp                              # flat padded positions per sample
    xflat = xp.reshape(N, C_in, M0)

    # Flat-index offsets of the taps inside the padded volume (kd, kh, kw order).
    tap_offsets = tuple(kd * Hp * Wp + kh * Wp + kw
                        for kd in range(ksize)
                        for kh in range(ksize)
                        for kw in range(ksize))
    max_off = tap_offsets[-1]

    # Halo block: multiple of 128 lanes; the M tile is a multiple of the halo so the halo
    # BlockSpec uses pure Blocked indexing.
    halo = max(128, ((max_off + 127) // 128) * 128)
    tile_m = max(block_m, halo)
    tile_m = ((tile_m + halo - 1) // halo) * halo
    ratio = tile_m // halo

    n_tiles = (M0 + tile_m - 1) // tile_m          # flat-M tiles per sample
    m_out = n_tiles * tile_m                       # per-sample output flat length (cropped later)
    p_in = m_out + halo                            # input must cover last tile's halo

    xflat = jnp.pad(xflat, ((0, 0), (0, 0), (0, p_in - M0))).astype(compute_dtype)

    # (C_out, C_in, kd, kh, kw) -> (k^3, C_out, C_in), tap-major (matches tap_offsets order).
    w_taps = weight.transpose(2, 3, 4, 0, 1).reshape(ksize ** 3, C_out, C_in)
    w_taps = w_taps.astype(compute_dtype)
    b2 = bias.reshape(C_out, 1).astype(jnp.float32)

    itemsize = jnp.dtype(compute_dtype).itemsize
    cost = pl.CostEstimate(
        flops=2 * C_out * C_in * (ksize ** 3) * N * m_out,
        transcendentals=0,
        bytes_accessed=int(N * C_in * p_in * itemsize                 # streamed input
                           + N * n_tiles * C_in * halo * itemsize     # halo re-reads
                           + w_taps.size * itemsize
                           + b2.size * 4
                           + N * C_out * m_out * 4),                  # output
    )

    out_flat = pl.pallas_call(
        _make_conv_relu_kernel(tap_offsets),
        out_shape=jax.ShapeDtypeStruct((N, C_out, m_out), jnp.float32),
        grid_spec=pltpu.PrefetchScalarGridSpec(
            num_scalar_prefetch=0,
            grid=(N, n_tiles),
            in_specs=[
                pl.BlockSpec((None, C_in, tile_m), lambda n, m: (n, 0, m)),               # cur tile
                pl.BlockSpec((None, C_in, halo), lambda n, m: (n, 0, (m + 1) * ratio)),   # halo
                pl.BlockSpec((ksize ** 3, C_out, C_in), lambda n, m: (0, 0, 0)),          # weights
                pl.BlockSpec((C_out, 1), lambda n, m: (0, 0)),                            # bias
            ],
            out_specs=pl.BlockSpec((None, C_out, tile_m), lambda n, m: (n, 0, m)),
        ),
        compiler_params=pltpu.CompilerParams(
            dimension_semantics=("parallel", "parallel")),
        cost_estimate=cost,
    )(xflat, xflat, w_taps, b2)

    # Crop padded-border garbage positions; already in (N, C_out, ...) order -> no transpose.
    out = out_flat[:, :, :M0].reshape(N, C_out, Dp, Hp, Wp)[:, :, :D, :H, :W]
    return out.astype(x.dtype)


if __name__ == "__main__":
    key = jax.random.PRNGKey(0)
    k_x, k_w, k_b = jax.random.split(key, 3)

    N, C_in, C_out = 2, 4, 8
    D = H = W = 8
    ksize = 3

    x = jax.random.normal(k_x, (N, C_in, D, H, W), dtype=jnp.float32)
    fan_in = C_in * ksize ** 3
    bound = 1.0 / (fan_in ** 0.5)
    weight = jax.random.uniform(k_w, (C_out, C_in, ksize, ksize, ksize),
                                dtype=jnp.float32, minval=-bound, maxval=bound)
    bias = jax.random.uniform(k_b, (C_out,), dtype=jnp.float32,
                              minval=-bound, maxval=bound)

    # Small block_m so the tiny test still exercises a multi-step pipelined grid.
    out = jax.block_until_ready(
        base_conv_forward(x, weight, bias, ksize=ksize, block_m=512))

    # Reference: XLA conv + bias + ReLU with the same bf16 input quantization the kernel
    # uses on the MXU (accumulation is f32 in both paths).
    xq = x.astype(jnp.bfloat16).astype(jnp.float32)
    wq = weight.astype(jnp.bfloat16).astype(jnp.float32)
    ref = lax.conv_general_dilated(
        xq, wq, window_strides=(1, 1, 1), padding="SAME",
        dimension_numbers=("NCDHW", "OIDHW", "NCDHW"),
        precision=lax.Precision.HIGHEST)
    ref = jnp.maximum(ref + bias.reshape(1, C_out, 1, 1, 1), 0.0)

    assert out.shape == (N, C_out, D, H, W)
    assert jnp.allclose(out, ref, atol=1e-2, rtol=1e-2), \
        float(jnp.max(jnp.abs(out - ref)))

    print("KERNEL_OK")
</pallas_src>

<mosaic_0001>
module attributes {stable_mosaic.version = 11 : i64} {
  func.func @kernel(%arg0: i32, %arg1: i32, %arg2: memref<1x4x512xbf16, #tpu.memory_space<vmem>>, %arg3: memref<1x4x256xbf16, #tpu.memory_space<vmem>>, %arg4: memref<27x8x4xbf16, #tpu.memory_space<vmem>>, %arg5: memref<8x1xf32, #tpu.memory_space<vmem>>, %arg6: memref<1x8x512xf32, #tpu.memory_space<vmem>>) attributes {dimension_semantics = [#tpu.dimension_semantics<parallel>, #tpu.dimension_semantics<parallel>], iteration_bounds = array<i64: 2, 2>, scalar_prefetch = 0 : i64, scratch_operands = 0 : i64, tpu.core_type = #tpu.core_type<tc>, window_params = [{transform_indices = @transform_0, window_bounds = array<i64: 1, 4, 512>}, {transform_indices = @transform_1, window_bounds = array<i64: 1, 4, 256>}, {pipeline_mode = #tpu.pipeline_mode<synchronous>, transform_indices = @transform_2, window_bounds = array<i64: 27, 8, 4>}, {pipeline_mode = #tpu.pipeline_mode<synchronous>, transform_indices = @transform_3, window_bounds = array<i64: 8, 1>}, {transform_indices = @transform_4, window_bounds = array<i64: 1, 8, 512>}]} {
    %c0 = arith.constant 0 : index
    %c0_0 = arith.constant 0 : index
    %c0_1 = arith.constant 0 : index
    %0 = vector.load %arg2[%c0, %c0_0, %c0_1] : memref<1x4x512xbf16, #tpu.memory_space<vmem>>, vector<1x4x512xbf16>
    %1 = vector.shape_cast %0 : vector<1x4x512xbf16> to vector<4x512xbf16>
    %c0_2 = arith.constant 0 : index
    %c0_3 = arith.constant 0 : index
    %c0_4 = arith.constant 0 : index
    %2 = vector.load %arg3[%c0_2, %c0_3, %c0_4] : memref<1x4x256xbf16, #tpu.memory_space<vmem>>, vector<1x4x256xbf16>
    %3 = vector.shape_cast %2 : vector<1x4x256xbf16> to vector<4x256xbf16>
    %4 = tpu.concatenate %1, %3 in 1 : vector<4x512xbf16>, vector<4x256xbf16> -> vector<4x768xbf16>
    %cst = arith.constant 0.000000e+00 : f32
    %5 = vector.broadcast %cst : f32 to vector<8x512xf32>
    %c0_5 = arith.constant 0 : index
    %c0_6 = arith.constant 0 : index
    %c0_7 = arith.constant 0 : index
    %6 = vector.load %arg4[%c0_5, %c0_6, %c0_7] : memref<27x8x4xbf16, #tpu.memory_space<vmem>>, vector<1x8x4xbf16>
    %7 = vector.shape_cast %6 : vector<1x8x4xbf16> to vector<8x4xbf16>
    %8 = vector.extract_strided_slice %4 {offsets = [0, 0], sizes = [4, 512], strides = [1, 1]} : vector<4x768xbf16> to vector<4x512xbf16>
    %cst_8 = arith.constant dense<0.000000e+00> : vector<8x512xf32>
    %9 = tpu.matmul %7, %8, %cst_8 {dimension_numbers = #tpu.dot_dimension_numbers<[1], [0], [0], [1], [0, 0, 1, 1], [], []>} : vector<8x4xbf16>, vector<4x512xbf16>, vector<8x512xf32> -> vector<8x512xf32>
    %10 = arith.addf %5, %9 : vector<8x512xf32>
    %c1 = arith.constant 1 : index
    %c0_9 = arith.constant 0 : index
    %c0_10 = arith.constant 0 : index
    %11 = vector.load %arg4[%c1, %c0_9, %c0_10] : memref<27x8x4xbf16, #tpu.memory_space<vmem>>, vector<1x8x4xbf16>
    %12 = vector.shape_cast %11 : vector<1x8x4xbf16> to vector<8x4xbf16>
    %13 = vector.extract_strided_slice %4 {offsets = [0, 1], sizes = [4, 512], strides = [1, 1]} : vector<4x768xbf16> to vector<4x512xbf16>
    %cst_11 = arith.constant dense<0.000000e+00> : vector<8x512xf32>
    %14 = tpu.matmul %12, %13, %cst_11 {dimension_numbers = #tpu.dot_dimension_numbers<[1], [0], [0], [1], [0, 0, 1, 1], [], []>} : vector<8x4xbf16>, vector<4x512xbf16>, vector<8x512xf32> -> vector<8x512xf32>
    %15 = arith.addf %10, %14 : vector<8x512xf32>
    %c2 = arith.constant 2 : index
    %c0_12 = arith.constant 0 : index
    %c0_13 = arith.constant 0 : index
    %16 = vector.load %arg4[%c2, %c0_12, %c0_13] : memref<27x8x4xbf16, #tpu.memory_space<vmem>>, vector<1x8x4xbf16>
    %17 = vector.shape_cast %16 : vector<1x8x4xbf16> to vector<8x4xbf16>
    %18 = vector.extract_strided_slice %4 {offsets = [0, 2], sizes = [4, 512], strides = [1, 1]} : vector<4x768xbf16> to vector<4x512xbf16>
    %cst_14 = arith.constant dense<0.000000e+00> : vector<8x512xf32>
    %19 = tpu.matmul %17, %18, %cst_14 {dimension_numbers = #tpu.dot_dimension_numbers<[1], [0], [0], [1], [0, 0, 1, 1], [], []>} : vector<8x4xbf16>, vector<4x512xbf16>, vector<8x512xf32> -> vector<8x512xf32>
    %20 = arith.addf %15, %19 : vector<8x512xf32>
    %c3 = arith.constant 3 : index
    %c0_15 = arith.constant 0 : index
    %c0_16 = arith.constant 0 : index
    %21 = vector.load %arg4[%c3, %c0_15, %c0_16] : memref<27x8x4xbf16, #tpu.memory_space<vmem>>, vector<1x8x4xbf16>
    %22 = vector.shape_cast %21 : vector<1x8x4xbf16> to vector<8x4xbf16>
    %23 = vector.extract_strided_slice %4 {offsets = [0, 10], sizes = [4, 512], strides = [1, 1]} : vector<4x768xbf16> to vector<4x512xbf16>
    %cst_17 = arith.constant dense<0.000000e+00> : vector<8x512xf32>
    %24 = tpu.matmul %22, %23, %cst_17 {dimension_numbers = #tpu.dot_dimension_numbers<[1], [0], [0], [1], [0, 0, 1, 1], [], []>} : vector<8x4xbf16>, vector<4x512xbf16>, vector<8x512xf32> -> vector<8x512xf32>
    %25 = arith.addf %20, %24 : vector<8x512xf32>
    %c4 = arith.constant 4 : index
    %c0_18 = arith.constant 0 : index
    %c0_19 = arith.constant 0 : index
    %26 = vector.load %arg4[%c4, %c0_18, %c0_19] : memref<27x8x4xbf16, #tpu.memory_space<vmem>>, vector<1x8x4xbf16>
    %27 = vector.shape_cast %26 : vector<1x8x4xbf16> to vector<8x4xbf16>
    %28 = vector.extract_strided_slice %4 {offsets = [0, 11], sizes = [4, 512], strides = [1, 1]} : vector<4x768xbf16> to vector<4x512xbf16>
    %cst_20 = arith.constant dense<0.000000e+00> : vector<8x512xf32>
    %29 = tpu.matmul %27, %28, %cst_20 {dimension_numbers = #tpu.dot_dimension_numbers<[1], [0], [0], [1], [0, 0, 1, 1], [], []>} : vector<8x4xbf16>, vector<4x512xbf16>, vector<8x512xf32> -> vector<8x512xf32>
    %30 = arith.addf %25, %29 : vector<8x512xf32>
    %c5 = arith.constant 5 : index
    %c0_21 = arith.constant 0 : index
    %c0_22 = arith.constant 0 : index
    %31 = vector.load %arg4[%c5, %c0_21, %c0_22] : memref<27x8x4xbf16, #tpu.memory_space<vmem>>, vector<1x8x4xbf16>
    %32 = vector.shape_cast %31 : vector<1x8x4xbf16> to vector<8x4xbf16>
    %33 = vector.extract_strided_slice %4 {offsets = [0, 12], sizes = [4, 512], strides = [1, 1]} : vector<4x768xbf16> to vector<4x512xbf16>
    %cst_23 = arith.constant dense<0.000000e+00> : vector<8x512xf32>
    %34 = tpu.matmul %32, %33, %cst_23 {dimension_numbers = #tpu.dot_dimension_numbers<[1], [0], [0], [1], [0, 0, 1, 1], [], []>} : vector<8x4xbf16>, vector<4x512xbf16>, vector<8x512xf32> -> vector<8x512xf32>
    %35 = arith.addf %30, %34 : vector<8x512xf32>
    %c6 = arith.constant 6 : index
    %c0_24 = arith.constant 0 : index
    %c0_25 = arith.constant 0 : index
    %36 = vector.load %arg4[%c6, %c0_24, %c0_25] : memref<27x8x4xbf16, #tpu.memory_space<vmem>>, vector<1x8x4xbf16>
    %37 = vector.shape_cast %36 : vector<1x8x4xbf16> to vector<8x4xbf16>
    %38 = vector.extract_strided_slice %4 {offsets = [0, 20], sizes = [4, 512], strides = [1, 1]} : vector<4x768xbf16> to vector<4x512xbf16>
    %cst_26 = arith.constant dense<0.000000e+00> : vector<8x512xf32>
    %39 = tpu.matmul %37, %38, %cst_26 {dimension_numbers = #tpu.dot_dimension_numbers<[1], [0], [0], [1], [0, 0, 1, 1], [], []>} : vector<8x4xbf16>, vector<4x512xbf16>, vector<8x512xf32> -> vector<8x512xf32>
    %40 = arith.addf %35, %39 : vector<8x512xf32>
    %c7 = arith.constant 7 : index
    %c0_27 = arith.constant 0 : index
    %c0_28 = arith.constant 0 : index
    %41 = vector.load %arg4[%c7, %c0_27, %c0_28] : memref<27x8x4xbf16, #tpu.memory_space<vmem>>, vector<1x8x4xbf16>
    %42 = vector.shape_cast %41 : vector<1x8x4xbf16> to vector<8x4xbf16>
    %43 = vector.extract_strided_slice %4 {offsets = [0, 21], sizes = [4, 512], strides = [1, 1]} : vector<4x768xbf16> to vector<4x512xbf16>
    %cst_29 = arith.constant dense<0.000000e+00> : vector<8x512xf32>
    %44 = tpu.matmul %42, %43, %cst_29 {dimension_numbers = #tpu.dot_dimension_numbers<[1], [0], [0], [1], [0, 0, 1, 1], [], []>} : vector<8x4xbf16>, vector<4x512xbf16>, vector<8x512xf32> -> vector<8x512xf32>
    %45 = arith.addf %40, %44 : vector<8x512xf32>
    %c8 = arith.constant 8 : index
    %c0_30 = arith.constant 0 : index
    %c0_31 = arith.constant 0 : index
    %46 = vector.load %arg4[%c8, %c0_30, %c0_31] : memref<27x8x4xbf16, #tpu.memory_space<vmem>>, vector<1x8x4xbf16>
    %47 = vector.shape_cast %46 : vector<1x8x4xbf16> to vector<8x4xbf16>
    %48 = vector.extract_strided_slice %4 {offsets = [0, 22], sizes = [4, 512], strides = [1, 1]} : vector<4x768xbf16> to vector<4x512xbf16>
    %cst_32 = arith.constant dense<0.000000e+00> : vector<8x512xf32>
    %49 = tpu.matmul %47, %48, %cst_32 {dimension_numbers = #tpu.dot_dimension_numbers<[1], [0], [0], [1], [0, 0, 1, 1], [], []>} : vector<8x4xbf16>, vector<4x512xbf16>, vector<8x512xf32> -> vector<8x512xf32>
    %50 = arith.addf %45, %49 : vector<8x512xf32>
    %c9 = arith.constant 9 : index
    %c0_33 = arith.constant 0 : index
    %c0_34 = arith.constant 0 : index
    %51 = vector.load %arg4[%c9, %c0_33, %c0_34] : memref<27x8x4xbf16, #tpu.memory_space<vmem>>, vector<1x8x4xbf16>
    %52 = vector.shape_cast %51 : vector<1x8x4xbf16> to vector<8x4xbf16>
    %53 = vector.extract_strided_slice %4 {offsets = [0, 100], sizes = [4, 512], strides = [1, 1]} : vector<4x768xbf16> to vector<4x512xbf16>
    %cst_35 = arith.constant dense<0.000000e+00> : vector<8x512xf32>
    %54 = tpu.matmul %52, %53, %cst_35 {dimension_numbers = #tpu.dot_dimension_numbers<[1], [0], [0], [1], [0, 0, 1, 1], [], []>} : vector<8x4xbf16>, vector<4x512xbf16>, vector<8x512xf32> -> vector<8x512xf32>
    %55 = arith.addf %50, %54 : vector<8x512xf32>
    %c10 = arith.constant 10 : index
    %c0_36 = arith.constant 0 : index
    %c0_37 = arith.constant 0 : index
    %56 = vector.load %arg4[%c10, %c0_36, %c0_37] : memref<27x8x4xbf16, #tpu.memory_space<vmem>>, vector<1x8x4xbf16>
    %57 = vector.shape_cast %56 : vector<1x8x4xbf16> to vector<8x4xbf16>
    %58 = vector.extract_strided_slice %4 {offsets = [0, 101], sizes = [4, 512], strides = [1, 1]} : vector<4x768xbf16> to vector<4x512xbf16>
    %cst_38 = arith.constant dense<0.000000e+00> : vector<8x512xf32>
    %59 = tpu.matmul %57, %58, %cst_38 {dimension_numbers = #tpu.dot_dimension_numbers<[1], [0], [0], [1], [0, 0, 1, 1], [], []>} : vector<8x4xbf16>, vector<4x512xbf16>, vector<8x512xf32> -> vector<8x512xf32>
    %60 = arith.addf %55, %59 : vector<8x512xf32>
    %c11 = arith.constant 11 : index
    %c0_39 = arith.constant 0 : index
    %c0_40 = arith.constant 0 : index
    %61 = vector.load %arg4[%c11, %c0_39, %c0_40] : memref<27x8x4xbf16, #tpu.memory_space<vmem>>, vector<1x8x4xbf16>
    %62 = vector.shape_cast %61 : vector<1x8x4xbf16> to vector<8x4xbf16>
    %63 = vector.extract_strided_slice %4 {offsets = [0, 102], sizes = [4, 512], strides = [1, 1]} : vector<4x768xbf16> to vector<4x512xbf16>
    %cst_41 = arith.constant dense<0.000000e+00> : vector<8x512xf32>
    %64 = tpu.matmul %62, %63, %cst_41 {dimension_numbers = #tpu.dot_dimension_numbers<[1], [0], [0], [1], [0, 0, 1, 1], [], []>} : vector<8x4xbf16>, vector<4x512xbf16>, vector<8x512xf32> -> vector<8x512xf32>
    %65 = arith.addf %60, %64 : vector<8x512xf32>
    %c12 = arith.constant 12 : index
    %c0_42 = arith.constant 0 : index
    %c0_43 = arith.constant 0 : index
    %66 = vector.load %arg4[%c12, %c0_42, %c0_43] : memref<27x8x4xbf16, #tpu.memory_space<vmem>>, vector<1x8x4xbf16>
    %67 = vector.shape_cast %66 : vector<1x8x4xbf16> to vector<8x4xbf16>
    %68 = vector.extract_strided_slice %4 {offsets = [0, 110], sizes = [4, 512], strides = [1, 1]} : vector<4x768xbf16> to vector<4x512xbf16>
    %cst_44 = arith.constant dense<0.000000e+00> : vector<8x512xf32>
    %69 = tpu.matmul %67, %68, %cst_44 {dimension_numbers = #tpu.dot_dimension_numbers<[1], [0], [0], [1], [0, 0, 1, 1], [], []>} : vector<8x4xbf16>, vector<4x512xbf16>, vector<8x512xf32> -> vector<8x512xf32>
    %70 = arith.addf %65, %69 : vector<8x512xf32>
    %c13 = arith.constant 13 : index
    %c0_45 = arith.constant 0 : index
    %c0_46 = arith.constant 0 : index
    %71 = vector.load %arg4[%c13, %c0_45, %c0_46] : memref<27x8x4xbf16, #tpu.memory_space<vmem>>, vector<1x8x4xbf16>
    %72 = vector.shape_cast %71 : vector<1x8x4xbf16> to vector<8x4xbf16>
    %73 = vector.extract_strided_slice %4 {offsets = [0, 111], sizes = [4, 512], strides = [1, 1]} : vector<4x768xbf16> to vector<4x512xbf16>
    %cst_47 = arith.constant dense<0.000000e+00> : vector<8x512xf32>
    %74 = tpu.matmul %72, %73, %cst_47 {dimension_numbers = #tpu.dot_dimension_numbers<[1], [0], [0], [1], [0, 0, 1, 1], [], []>} : vector<8x4xbf16>, vector<4x512xbf16>, vector<8x512xf32> -> vector<8x512xf32>
    %75 = arith.addf %70, %74 : vector<8x512xf32>
    %c14 = arith.constant 14 : index
    %c0_48 = arith.constant 0 : index
    %c0_49 = arith.constant 0 : index
    %76 = vector.load %arg4[%c14, %c0_48, %c0_49] : memref<27x8x4xbf16, #tpu.memory_space<vmem>>, vector<1x8x4xbf16>
    %77 = vector.shape_cast %76 : vector<1x8x4xbf16> to vector<8x4xbf16>
    %78 = vector.extract_strided_slice %4 {offsets = [0, 112], sizes = [4, 512], strides = [1, 1]} : vector<4x768xbf16> to vector<4x512xbf16>
    %cst_50 = arith.constant dense<0.000000e+00> : vector<8x512xf32>
    %79 = tpu.matmul %77, %78, %cst_50 {dimension_numbers = #tpu.dot_dimension_numbers<[1], [0], [0], [1], [0, 0, 1, 1], [], []>} : vector<8x4xbf16>, vector<4x512xbf16>, vector<8x512xf32> -> vector<8x512xf32>
    %80 = arith.addf %75, %79 : vector<8x512xf32>
    %c15 = arith.constant 15 : index
    %c0_51 = arith.constant 0 : index
    %c0_52 = arith.constant 0 : index
    %81 = vector.load %arg4[%c15, %c0_51, %c0_52] : memref<27x8x4xbf16, #tpu.memory_space<vmem>>, vector<1x8x4xbf16>
    %82 = vector.shape_cast %81 : vector<1x8x4xbf16> to vector<8x4xbf16>
    %83 = vector.extract_strided_slice %4 {offsets = [0, 120], sizes = [4, 512], strides = [1, 1]} : vector<4x768xbf16> to vector<4x512xbf16>
    %cst_53 = arith.constant dense<0.000000e+00> : vector<8x512xf32>
    %84 = tpu.matmul %82, %83, %cst_53 {dimension_numbers = #tpu.dot_dimension_numbers<[1], [0], [0], [1], [0, 0, 1, 1], [], []>} : vector<8x4xbf16>, vector<4x512xbf16>, vector<8x512xf32> -> vector<8x512xf32>
    %85 = arith.addf %80, %84 : vector<8x512xf32>
    %c16 = arith.constant 16 : index
    %c0_54 = arith.constant 0 : index
    %c0_55 = arith.constant 0 : index
    %86 = vector.load %arg4[%c16, %c0_54, %c0_55] : memref<27x8x4xbf16, #tpu.memory_space<vmem>>, vector<1x8x4xbf16>
    %87 = vector.shape_cast %86 : vector<1x8x4xbf16> to vector<8x4xbf16>
    %88 = vector.extract_strided_slice %4 {offsets = [0, 121], sizes = [4, 512], strides = [1, 1]} : vector<4x768xbf16> to vector<4x512xbf16>
    %cst_56 = arith.constant dense<0.000000e+00> : vector<8x512xf32>
    %89 = tpu.matmul %87, %88, %cst_56 {dimension_numbers = #tpu.dot_dimension_numbers<[1], [0], [0], [1], [0, 0, 1, 1], [], []>} : vector<8x4xbf16>, vector<4x512xbf16>, vector<8x512xf32> -> vector<8x512xf32>
    %90 = arith.addf %85, %89 : vector<8x512xf32>
    %c17 = arith.constant 17 : index
    %c0_57 = arith.constant 0 : index
    %c0_58 = arith.constant 0 : index
    %91 = vector.load %arg4[%c17, %c0_57, %c0_58] : memref<27x8x4xbf16, #tpu.memory_space<vmem>>, vector<1x8x4xbf16>
    %92 = vector.shape_cast %91 : vector<1x8x4xbf16> to vector<8x4xbf16>
    %93 = vector.extract_strided_slice %4 {offsets = [0, 122], sizes = [4, 512], strides = [1, 1]} : vector<4x768xbf16> to vector<4x512xbf16>
    %cst_59 = arith.constant dense<0.000000e+00> : vector<8x512xf32>
    %94 = tpu.matmul %92, %93, %cst_59 {dimension_numbers = #tpu.dot_dimension_numbers<[1], [0], [0], [1], [0, 0, 1, 1], [], []>} : vector<8x4xbf16>, vector<4x512xbf16>, vector<8x512xf32> -> vector<8x512xf32>
    %95 = arith.addf %90, %94 : vector<8x512xf32>
    %c18 = arith.constant 18 : index
    %c0_60 = arith.constant 0 : index
    %c0_61 = arith.constant 0 : index
    %96 = vector.load %arg4[%c18, %c0_60, %c0_61] : memref<27x8x4xbf16, #tpu.memory_space<vmem>>, vector<1x8x4xbf16>
    %97 = vector.shape_cast %96 : vector<1x8x4xbf16> to vector<8x4xbf16>
    %98 = vector.extract_strided_slice %4 {offsets = [0, 200], sizes = [4, 512], strides = [1, 1]} : vector<4x768xbf16> to vector<4x512xbf16>
    %cst_62 = arith.constant dense<0.000000e+00> : vector<8x512xf32>
    %99 = tpu.matmul %97, %98, %cst_62 {dimension_numbers = #tpu.dot_dimension_numbers<[1], [0], [0], [1], [0, 0, 1, 1], [], []>} : vector<8x4xbf16>, vector<4x512xbf16>, vector<8x512xf32> -> vector<8x512xf32>
    %100 = arith.addf %95, %99 : vector<8x512xf32>
    %c19 = arith.constant 19 : index
    %c0_63 = arith.constant 0 : index
    %c0_64 = arith.constant 0 : index
    %101 = vector.load %arg4[%c19, %c0_63, %c0_64] : memref<27x8x4xbf16, #tpu.memory_space<vmem>>, vector<1x8x4xbf16>
    %102 = vector.shape_cast %101 : vector<1x8x4xbf16> to vector<8x4xbf16>
    %103 = vector.extract_strided_slice %4 {offsets = [0, 201], sizes = [4, 512], strides = [1, 1]} : vector<4x768xbf16> to vector<4x512xbf16>
    %cst_65 = arith.constant dense<0.000000e+00> : vector<8x512xf32>
    %104 = tpu.matmul %102, %103, %cst_65 {dimension_numbers = #tpu.dot_dimension_numbers<[1], [0], [0], [1], [0, 0, 1, 1], [], []>} : vector<8x4xbf16>, vector<4x512xbf16>, vector<8x512xf32> -> vector<8x512xf32>
    %105 = arith.addf %100, %104 : vector<8x512xf32>
    %c20 = arith.constant 20 : index
    %c0_66 = arith.constant 0 : index
    %c0_67 = arith.constant 0 : index
    %106 = vector.load %arg4[%c20, %c0_66, %c0_67] : memref<27x8x4xbf16, #tpu.memory_space<vmem>>, vector<1x8x4xbf16>
    %107 = vector.shape_cast %106 : vector<1x8x4xbf16> to vector<8x4xbf16>
    %108 = vector.extract_strided_slice %4 {offsets = [0, 202], sizes = [4, 512], strides = [1, 1]} : vector<4x768xbf16> to vector<4x512xbf16>
    %cst_68 = arith.constant dense<0.000000e+00> : vector<8x512xf32>
    %109 = tpu.matmul %107, %108, %cst_68 {dimension_numbers = #tpu.dot_dimension_numbers<[1], [0], [0], [1], [0, 0, 1, 1], [], []>} : vector<8x4xbf16>, vector<4x512xbf16>, vector<8x512xf32> -> vector<8x512xf32>
    %110 = arith.addf %105, %109 : vector<8x512xf32>
    %c21 = arith.constant 21 : index
    %c0_69 = arith.constant 0 : index
    %c0_70 = arith.constant 0 : index
    %111 = vector.load %arg4[%c21, %c0_69, %c0_70] : memref<27x8x4xbf16, #tpu.memory_space<vmem>>, vector<1x8x4xbf16>
    %112 = vector.shape_cast %111 : vector<1x8x4xbf16> to vector<8x4xbf16>
    %113 = vector.extract_strided_slice %4 {offsets = [0, 210], sizes = [4, 512], strides = [1, 1]} : vector<4x768xbf16> to vector<4x512xbf16>
    %cst_71 = arith.constant dense<0.000000e+00> : vector<8x512xf32>
    %114 = tpu.matmul %112, %113, %cst_71 {dimension_numbers = #tpu.dot_dimension_numbers<[1], [0], [0], [1], [0, 0, 1, 1], [], []>} : vector<8x4xbf16>, vector<4x512xbf16>, vector<8x512xf32> -> vector<8x512xf32>
    %115 = arith.addf %110, %114 : vector<8x512xf32>
    %c22 = arith.constant 22 : index
    %c0_72 = arith.constant 0 : index
    %c0_73 = arith.constant 0 : index
    %116 = vector.load %arg4[%c22, %c0_72, %c0_73] : memref<27x8x4xbf16, #tpu.memory_space<vmem>>, vector<1x8x4xbf16>
    %117 = vector.shape_cast %116 : vector<1x8x4xbf16> to vector<8x4xbf16>
    %118 = vector.extract_strided_slice %4 {offsets = [0, 211], sizes = [4, 512], strides = [1, 1]} : vector<4x768xbf16> to vector<4x512xbf16>
    %cst_74 = arith.constant dense<0.000000e+00> : vector<8x512xf32>
    %119 = tpu.matmul %117, %118, %cst_74 {dimension_numbers = #tpu.dot_dimension_numbers<[1], [0], [0], [1], [0, 0, 1, 1], [], []>} : vector<8x4xbf16>, vector<4x512xbf16>, vector<8x512xf32> -> vector<8x512xf32>
    %120 = arith.addf %115, %119 : vector<8x512xf32>
    %c23 = arith.constant 23 : index
    %c0_75 = arith.constant 0 : index
    %c0_76 = arith.constant 0 : index
    %121 = vector.load %arg4[%c23, %c0_75, %c0_76] : memref<27x8x4xbf16, #tpu.memory_space<vmem>>, vector<1x8x4xbf16>
    %122 = vector.shape_cast %121 : vector<1x8x4xbf16> to vector<8x4xbf16>
    %123 = vector.extract_strided_slice %4 {offsets = [0, 212], sizes = [4, 512], strides = [1, 1]} : vector<4x768xbf16> to vector<4x512xbf16>
    %cst_77 = arith.constant dense<0.000000e+00> : vector<8x512xf32>
    %124 = tpu.matmul %122, %123, %cst_77 {dimension_numbers = #tpu.dot_dimension_numbers<[1], [0], [0], [1], [0, 0, 1, 1], [], []>} : vector<8x4xbf16>, vector<4x512xbf16>, vector<8x512xf32> -> vector<8x512xf32>
    %125 = arith.addf %120, %124 : vector<8x512xf32>
    %c24 = arith.constant 24 : index
    %c0_78 = arith.constant 0 : index
    %c0_79 = arith.constant 0 : index
    %126 = vector.load %arg4[%c24, %c0_78, %c0_79] : memref<27x8x4xbf16, #tpu.memory_space<vmem>>, vector<1x8x4xbf16>
    %127 = vector.shape_cast %126 : vector<1x8x4xbf16> to vector<8x4xbf16>
    %128 = vector.extract_strided_slice %4 {offsets = [0, 220], sizes = [4, 512], strides = [1, 1]} : vector<4x768xbf16> to vector<4x512xbf16>
    %cst_80 = arith.constant dense<0.000000e+00> : vector<8x512xf32>
    %129 = tpu.matmul %127, %128, %cst_80 {dimension_numbers = #tpu.dot_dimension_numbers<[1], [0], [0], [1], [0, 0, 1, 1], [], []>} : vector<8x4xbf16>, vector<4x512xbf16>, vector<8x512xf32> -> vector<8x512xf32>
    %130 = arith.addf %125, %129 : vector<8x512xf32>
    %c25 = arith.constant 25 : index
    %c0_81 = arith.constant 0 : index
    %c0_82 = arith.constant 0 : index
    %131 = vector.load %arg4[%c25, %c0_81, %c0_82] : memref<27x8x4xbf16, #tpu.memory_space<vmem>>, vector<1x8x4xbf16>
    %132 = vector.shape_cast %131 : vector<1x8x4xbf16> to vector<8x4xbf16>
    %133 = vector.extract_strided_slice %4 {offsets = [0, 221], sizes = [4, 512], strides = [1, 1]} : vector<4x768xbf16> to vector<4x512xbf16>
    %cst_83 = arith.constant dense<0.000000e+00> : vector<8x512xf32>
    %134 = tpu.matmul %132, %133, %cst_83 {dimension_numbers = #tpu.dot_dimension_numbers<[1], [0], [0], [1], [0, 0, 1, 1], [], []>} : vector<8x4xbf16>, vector<4x512xbf16>, vector<8x512xf32> -> vector<8x512xf32>
    %135 = arith.addf %130, %134 : vector<8x512xf32>
    %c26 = arith.constant 26 : index
    %c0_84 = arith.constant 0 : index
    %c0_85 = arith.constant 0 : index
    %136 = vector.load %arg4[%c26, %c0_84, %c0_85] : memref<27x8x4xbf16, #tpu.memory_space<vmem>>, vector<1x8x4xbf16>
    %137 = vector.shape_cast %136 : vector<1x8x4xbf16> to vector<8x4xbf16>
    %138 = vector.extract_strided_slice %4 {offsets = [0, 222], sizes = [4, 512], strides = [1, 1]} : vector<4x768xbf16> to vector<4x512xbf16>
    %cst_86 = arith.constant dense<0.000000e+00> : vector<8x512xf32>
    %139 = tpu.matmul %137, %138, %cst_86 {dimension_numbers = #tpu.dot_dimension_numbers<[1], [0], [0], [1], [0, 0, 1, 1], [], []>} : vector<8x4xbf16>, vector<4x512xbf16>, vector<8x512xf32> -> vector<8x512xf32>
    %140 = arith.addf %135, %139 : vector<8x512xf32>
    %c0_87 = arith.constant 0 : index
    %c0_88 = arith.constant 0 : index
    %141 = vector.load %arg5[%c0_87, %c0_88] : memref<8x1xf32, #tpu.memory_space<vmem>>, vector<8x1xf32>
    %142 = vector.broadcast %141 : vector<8x1xf32> to vector<8x512xf32>
    %143 = arith.addf %140, %142 : vector<8x512xf32>
    %cst_89 = arith.constant 0.000000e+00 : f32
    %144 = vector.broadcast %cst_89 : f32 to vector<8x512xf32>
    %145 = arith.maximumf %143, %144 : vector<8x512xf32>
    %c0_90 = arith.constant 0 : index
    %c0_91 = arith.constant 0 : index
    %c0_92 = arith.constant 0 : index
    %146 = vector.load %arg6[%c0_90, %c0_91, %c0_92] : memref<1x8x512xf32, #tpu.memory_space<vmem>>, vector<1x8x512xf32>
    %147 = vector.shape_cast %146 : vector<1x8x512xf32> to vector<8x512xf32>
    %148 = vector.shape_cast %145 : vector<8x512xf32> to vector<1x8x512xf32>
    tpu.vector_store %arg6[%c0_90, %c0_91, %c0_92], %148 {strides = array<i32>} : memref<1x8x512xf32, #tpu.memory_space<vmem>>, vector<1x8x512xf32>,
    return
  }
  func.func @transform_0(%arg0: i32, %arg1: i32) -> (i32, i32, i32) {
    %c0_i32 = arith.constant 0 : i32
    %c0_i32_0 = arith.constant 0 : i32
    return %arg0, %c0_i32, %arg1 : i32, i32, i32
  }
  func.func @transform_1(%arg0: i32, %arg1: i32) -> (i32, i32, i32) {
    %c1_i32 = arith.constant 1 : i32
    %0 = arith.addi %arg1, %c1_i32 : i32
    %c2_i32 = arith.constant 2 : i32
    %1 = arith.muli %0, %c2_i32 : i32
    %c0_i32 = arith.constant 0 : i32
    %c0_i32_0 = arith.constant 0 : i32
    return %arg0, %c0_i32, %1 : i32, i32, i32
  }
  func.func @transform_2(%arg0: i32, %arg1: i32) -> (i32, i32, i32) {
    %c0_i32 = arith.constant 0 : i32
    %c0_i32_0 = arith.constant 0 : i32
    %c0_i32_1 = arith.constant 0 : i32
    %c0_i32_2 = arith.constant 0 : i32
    return %c0_i32, %c0_i32_0, %c0_i32_1 : i32, i32, i32
  }
  func.func @transform_3(%arg0: i32, %arg1: i32) -> (i32, i32) {
    %c0_i32 = arith.constant 0 : i32
    %c0_i32_0 = arith.constant 0 : i32
    %c0_i32_1 = arith.constant 0 : i32
    return %c0_i32, %c0_i32_0 : i32, i32
  }
  func.func @transform_4(%arg0: i32, %arg1: i32) -> (i32, i32, i32) {
    %c0_i32 = arith.constant 0 : i32
    %c0_i32_0 = arith.constant 0 : i32
    return %arg0, %c0_i32, %arg1 : i32, i32, i32
  }
}

</mosaic_0001>

<bundles_post_ra>
// kernel: tpu_custom_call.1
= control target key start
LH: loop header
LB: loop body
LE: loop exit
PB: predicated region body
PF: predicated region fallthrough
CT: control target
= control target key end

     0   :  { %9 = vsyncpa [#allocation3], 0  ;;  %s3991_s0 = inlined_call_operand.vmem [shape: bf16[2,4,1280], index: 0, kind: input, shape index: {}]   ;;  %s3992_s1 = inlined_call_operand.vmem [shape: bf16[2,4,1280], index: 1, kind: input, shape index: {}]   ;;  %s3993_s2 = inlined_call_operand.vmem [shape: bf16[27,8,4], index: 2, kind: input, shape index: {}]   ;;  %s3994_s3 = inlined_call_operand.vmem [shape: f32[8,1], index: 3, kind: input, shape index: {}]   ;;  %s3995_s4 = inlined_call_operand.hbm [shape: f32[2,8,1024], index: 4, kind: output, shape index: {}]  }
   0x1   :  { %11 = vsyncpa [#allocation3 + $0x1], 0  ;;  %s3212_s15 = smov 0   ;;  %s3214_s16 = smov 0  }
   0x2   :  { %s3216_s17 = smov 0   ;;  %s3218_s18 = smov 0  }
   0x3   :  { %s3220_s19 = smov 0   ;;  %s3222_s20 = smov 0  }
   0x4   :  { %s3224_s21 = smov 0   ;;  %s3226_s22 = smov 0  }
   0x5 LB: > { %s2800_s23 = sadd.s32 4294967295, %s3158_s22   ;;  %s2801_s24 = sadd.s32 4294967294, %s3158_s22   ;;  %s3158_s22 = sphi %s3226_s22, %s17_s22   ;;  %s3154_s21 = sphi %s3224_s21, %s4007_s21   ;;  %s3150_s20 = sphi %s3222_s20, %s4006_s20   ;;  %s3146_s19 = sphi %s3220_s19, %s4005_s19   ;;  %s3142_s18 = sphi %s3218_s18, %s4004_s18   ;;  %s3138_s17 = sphi %s3216_s17, %s4003_s17   ;;  %s3134_s16 = sphi %s3214_s16, %s4002_s16   ;;  %s3130_s15 = sphi %s3212_s15, %s4001_s15  }
   0x6   : > { %s26_s25 = sadd.s32 1, %s3150_s20  ;;  %s29_s26 = sadd.s32 1, %s3154_s21 }
   0x7   : > { %p27_p0 = scmp.ge.s32.totalorder %s26_s25, 2  ;;  %p150_p1 = scmp.ne.s32.totalorder %s3138_s17, %s3134_s16 }
   0x8   : > { %p151_p2 = scmp.eq.s32.totalorder %s2800_s23, 3  ;;  %p156_p5 = scmp.ne.s32.totalorder %s3134_s16, %s3130_s15 }
   0x9   : > { %s4009_s25 = smov (%p27_p0, %s26_s25), 0  ;;  %s4011_s26 = smov (!%p27_p0, %s29_s26), %s3154_s21 }
   0xa   : > { %s136_s27 = ssub.s32 %s3150_s20, %s4009_s25  ;;  %p3263_p3 = por %p151_p2, %p150_p1 }
   0xb   : > { %p31_p4 = scmp.ge.s32.totalorder %s4011_s26, 2  ;;  %p157_p6 = scmp.eq.s32.totalorder %s2801_s24, 3 }
   0xc   : > { %p2806_p7 = scmp.ge.s32.totalorder %s3158_s22, 1  ;;  %p219_p9 = scmp.lt.s32.totalorder %s3158_s22, 5 }
   0xd   : > { %s4013_s26 = smov (%p31_p4, %s4011_s26), 0  ;;  %p3272_p8 = por %p157_p6, %p156_p5 }
   0xe   : > { %3998 = sst [smem:[#allocation5_spill]] %s4013_s26  ;;  %s135_s30 = ssub.s32 %s3154_s21, %s4013_s26 }
   0xf   : > { %s140_s5 = sadd.s32 1, %s3138_s17  ;;  %s137_s6 = sor.u32 %s136_s27, %s135_s30 }
  0x10   : > { %p220_p10 = pnand %p2806_p7, %p219_p9  ;;  %p138_p11 = scmp.eq.s32.totalorder %s137_s6, 0 }
  0x11   : > { %s3284_s8 = sshll.u32 (!%p220_p10), %s3142_s18, 2  ;;  %p269_p12 = scmp.lt.s32.totalorder (!%p220_p10), %s3146_s19, 1 }
  0x12   : > { %s3281_s7 = scalar_select %p138_p11, %s3138_s17, %s140_s5  }
  0x13   : > { %223 = sbr.rel (%p220_p10) target bundleno = 729 (0x2d9), region = 36  ;;  %p271_p13 = scmp.lt.s32.totalorder (!%p220_p10), %s3284_s8, 9 }
  0x14   : > { %s2961_s12 = sadd.s32 (!%p220_p10), 4, %s3284_s8  ;;  %s3167_s23 = smov (!%p220_p10), 106  }
  0x15   : > { %p287_p0 = scmp.lt.s32.totalorder (!%p220_p10), %s2961_s12, 9  ;;  %s3168_s24 = smov (!%p220_p10), 28  }
  0x16   : > { %s3170_s5 = smov (!%p220_p10), 26   ;;  %s3175_s6 = smov (!%p220_p10), 7  }
  0x18   : > { %s270_s9 = scalar_select %p269_p12, %s3146_s19, 1  ;;  %vm329_vm0 = vcmask 1039360   ;;  %vm338_vm1 = vcmask 1041408   ;;  %v2813_v14 = vld [vmem:[%s3993_s2 + $0x4] sm:$0xf]  ;;  %vm334_vm2 = vcmask 31744  }
  0x19   : > { %s272_s10 = scalar_select %p271_p13, %s3284_s8, 9  ;;  %vm478_vm3 = vcmask 1031168   ;;  %v316_v32 = vld [vmem:[%s3993_s2] sm:$0xf]  ;;  %vm566_vm4 = vcmask 965632   ;;  %vm654_vm5 = vcmask 957440  }
  0x1a   : > { %s2962_s11 = smul.u32 10, %s270_s9  ;;  %s4015_s12 = smov (!%p287_p0, %s2961_s12), 9  ;;  %v2822_v50 = vld [vmem:[%s3993_s2 + $0x8] sm:$0xf]  ;;  %v2827_v62 = vld [vmem:[%s3993_s2 + $0xc] sm:$0xf] }
  0x1b   : > { %s3160_s9 = smov 127   ;;  %vm742_vm6 = vcmask 949248   ;;  %vm830_vm7 = vcmask 883712   ;;  %vm918_vm8 = vcmask 875520   ;;  %vm1006_vm9 = vcmask 867328  }
  0x1c   : > { %s274_s13 = sadd.s32 %s2962_s11, %s272_s10  ;;  %s290_s18 = sadd.s32 %s2962_s11, %s4015_s12  ;;  %vm1094_vm10 = vcmask 228352   ;;  %vm1182_vm11 = vcmask 220160   ;;  %vm1270_vm12 = vcmask 211968   ;;  %vm1358_vm13 = vcmask 146432  }
  0x1d   : > { %s2809_s14 = sshll.u32 %s274_s13, 1  ;;  %s2812_s30 = sshll.u32 %s290_s18, 1  ;;  %vm1446_vm14 = vcmask 138240   ;;  %vm1534_vm15 = vcmask 130048  }
  0x1e   : > { %s276_s27 = scalar_lea.vmem %s3991_s0, %s2809_s14  ;;  %s292_s26 = scalar_lea.vmem %s3992_s1, %s2812_s30 }
  0x1f   : > { %v298_v0 = vld [vmem:[%s276_s27] sm:$0xff]  ;;  %s3162_s10 = smov 118   ;;  %s3163_s11 = smov 117  }
  0x20   : > { %301 = vst [vmem:[#allocation1] ss:$4 sm:$0xff] %v298_v0  ;;  %v299_v1 = vld [vmem:[%s292_s26] sm:$0xf]  ;;  %s3161_s26 = smov 126   ;;  %s3164_s12 = smov 116  }
  0x21   : > { %s3165_s13 = smov 108   ;;  %s3166_s14 = smov 107  }
  0x22   : > { %s3169_s30 = smov 27   ;;  %s3174_s18 = smov 8  }
  0x23   : > { %s3179_s27 = smov 54  }
  0x27   : > { %v3297_v2 = vld.sshfl [vmem:[#allocation1 + $0x10] sm:$0xff pattern:$0x73625140]  ;;  %v3299_v3 = vld.sshfl [vmem:[#allocation1] sm:$0xff pattern:$0x73625140] }
  0x28   : > { %323 = vrot.lane.b32.xlu0 %v3297_v2, %s3160_s9  ;;  %v3302_v4 = vld.sshfl [vmem:[#allocation1 + $0x8] sm:$0xff pattern:$0x73625140]  ;;  %v3304_v5 = vld.sshfl [vmem:[#allocation1 + $0x18] sm:$0xff pattern:$0x73625140] }
  0x29   : > { %311 = vst [vmem:[#allocation1] ss:$4 sm:$0xff] %v299_v1  ;;  %321 = vrot.lane.b32.xlu2 %v3302_v4, %s3160_s9  ;;  %v408_v12 = vsel %vm338_vm1, %v3302_v4, 0  ;;  %v410_v19 = vsel %vm338_vm1, %v3297_v2, 0  ;;  %v412_v22 = vsel %vm338_vm1, %v3304_v5, 0  ;;  %v406_v30 = vsel %vm338_vm1, %v3299_v3, 0 }
  0x30   : > { %325 = vrot.lane.b32.xlu0 %v3304_v5, %s3160_s9  ;;  %v3308_v6 = vld.sshfl [vmem:[#allocation1] sm:$0xff pattern:$0x73625140] }
  0x31   : > { %327 = vrot.lane.b32.xlu1 %v3308_v6, %s3160_s9  ;;  %472 = vrot.lane.b32.xlu2 %v3297_v2, %s3161_s26 }
  0x38   : > { %474 = vrot.lane.b32.xlu0 %v3304_v5, %s3161_s26 }
  0x39   : > { %319 = vrot.lane.b32.xlu1 %v3299_v3, %s3160_s9  ;;  %468 = vrot.lane.b32.xlu2 %v3299_v3, %s3161_s26  ;;  %s3176_s9 = smov 6  }
  0x40   : > { %470 = vrot.lane.b32.xlu0 %v3302_v4, %s3161_s26 }
  0x41   : > { %476 = vrot.lane.b32.xlu1 %v3308_v6, %s3161_s26  ;;  %562 = vrot.lane.b32.xlu2 %v3304_v5, %s3162_s10  ;;  %s3171_s26 = smov 18  }
  0x48   : > { %564 = vrot.lane.b32.xlu0 %v3308_v6, %s3162_s10 }
  0x49   : > { %560 = vrot.lane.b32.xlu1 %v3297_v2, %s3162_s10  ;;  %558 = vrot.lane.b32.xlu2 %v3302_v4, %s3162_s10 }
  0x50   : > { %648 = vrot.lane.b32.xlu0 %v3297_v2, %s3163_s11 }
  0x51   : > { %556 = vrot.lane.b32.xlu1 %v3299_v3, %s3162_s10  ;;  %652 = vrot.lane.b32.xlu2 %v3308_v6, %s3163_s11 }
  0x58   : > { %644 = vrot.lane.b32.xlu0 %v3299_v3, %s3163_s11 }
  0x59   : > { %650 = vrot.lane.b32.xlu1 %v3304_v5, %s3163_s11  ;;  %736 = vrot.lane.b32.xlu2 %v3297_v2, %s3164_s12 }
  0x60   : > { %738 = vrot.lane.b32.xlu0 %v3304_v5, %s3164_s12 }
  0x61   : > { %646 = vrot.lane.b32.xlu1 %v3302_v4, %s3163_s11  ;;  %732 = vrot.lane.b32.xlu2 %v3299_v3, %s3164_s12  ;;  %s3177_s11 = smov 56  }
  0x68   : > { %734 = vrot.lane.b32.xlu0 %v3302_v4, %s3164_s12 }
  0x69   : > { %740 = vrot.lane.b32.xlu1 %v3308_v6, %s3164_s12  ;;  %826 = vrot.lane.b32.xlu2 %v3304_v5, %s3165_s13  ;;  %s3172_s12 = smov 17  }
  0x70   : > { %828 = vrot.lane.b32.xlu0 %v3308_v6, %s3165_s13 }
  0x71   : > { %824 = vrot.lane.b32.xlu1 %v3297_v2, %s3165_s13  ;;  %822 = vrot.lane.b32.xlu2 %v3302_v4, %s3165_s13 }
  0x78   : > { %912 = vrot.lane.b32.xlu0 %v3297_v2, %s3166_s14 }
  0x79   : > { %820 = vrot.lane.b32.xlu1 %v3299_v3, %s3165_s13  ;;  %916 = vrot.lane.b32.xlu2 %v3308_v6, %s3166_s14 }
  0x80   : > { %908 = vrot.lane.b32.xlu0 %v3299_v3, %s3166_s14 }
  0x81   : > { %914 = vrot.lane.b32.xlu1 %v3304_v5, %s3166_s14  ;;  %1000 = vrot.lane.b32.xlu2 %v3297_v2, %s3167_s23 }
  0x83   : > { %v322_v7 = vpop.permute.xlu2 %321 }
  0x88   : > { %1002 = vrot.lane.b32.xlu0 %v3304_v5, %s3167_s23 }
  0x89   : > { %910 = vrot.lane.b32.xlu1 %v3302_v4, %s3166_s14  ;;  %996 = vrot.lane.b32.xlu2 %v3299_v3, %s3167_s23 }
  0x8b   : > { %v3345_v8 = vpop.permute.xlu2 %472 }
  0x90   : > { %998 = vrot.lane.b32.xlu0 %v3302_v4, %s3167_s23 }
  0x91   : > { %1004 = vrot.lane.b32.xlu1 %v3308_v6, %s3167_s23  ;;  %1090 = vrot.lane.b32.xlu2 %v3304_v5, %s3168_s24  ;;  %s3173_s23 = smov 16  }
  0x93   : > { %v469_v9 = vpop.permute.xlu2 %468 }
  0x98   : > { %1092 = vrot.lane.b32.xlu0 %v3308_v6, %s3168_s24 }
  0x99   : > { %1088 = vrot.lane.b32.xlu1 %v3297_v2, %s3168_s24  ;;  %1086 = vrot.lane.b32.xlu2 %v3302_v4, %s3168_s24 }
  0x9a   : > { %v324_v10 = vpop.permute.xlu0 %323 }
  0x9b   : > { %v331_v11 = vsel %vm329_vm0, %v322_v7, %v324_v10  ;;  %v3360_v15 = vpop.permute.xlu2 %562 }
  0x9c   : > { %v343_v13 = vsel %vm338_vm1, %v331_v11, 0 }
  0x9d   : > { %371 = vmatpush.bf16.msra.mxu1 %v343_v13 }
  0xa0   : > { %2815 = vmatmul.msk.bf16.vlgmr.msra.gmra.mxu1 %vm334_vm2, %v2813_v14  ;;  %1176 = vrot.lane.b32.xlu0 %v3297_v2, %s3169_s30 }
  0xa1   : > { %434 = vmatpush.bf16.msrb.mxu1 %v408_v12  ;;  %1084 = vrot.lane.b32.xlu1 %v3299_v3, %s3168_s24  ;;  %s3178_s24 = smov 55  }
  0xa2   : > { %1180 = vrot.lane.b32.xlu2 %v3308_v6, %s3169_s30  ;;  %v326_v16 = vpop.permute.xlu0 %325 }
  0xa3   : > { %v328_v17 = vpop.permute.xlu1 %327  ;;  %v332_v18 = vsel %vm329_vm0, %v324_v10, %v326_v16  ;;  %v559_v24 = vpop.permute.xlu2 %558 }
  0xa4   : > { %v346_v20 = vsel %vm338_vm1, %v332_v18, 0  ;;  %v333_v21 = vsel %vm329_vm0, %v326_v16, %v328_v17 }
  0xa5   : > { %384 = vmatpush.bf16.msra.mxu2 %v346_v20  ;;  %v349_v23 = vsel %vm338_vm1, %v333_v21, 0  ;;  %v2832_v21 = vld [vmem:[%s3993_s2 + $0x10] sm:$0xf] }
  0xa6   : > { %397 = vmatpush.bf16.msra.mxu3 %v349_v23 }
  0xa8   : > { %2816 = vmatmul.msk.bf16.vlgmr.msra.gmra.mxu2 %vm334_vm2, %v2813_v14  ;;  %1172 = vrot.lane.b32.xlu0 %v3299_v3, %s3169_s30 }
  0xa9   : > { %447 = vmatpush.bf16.msrb.mxu2 %v410_v19  ;;  %2817 = vmatmul.msk.bf16.vlgmr.msra.gmra.mxu3 %vm334_vm2, %v2813_v14 }
  0xaa   : > { %460 = vmatpush.bf16.msrb.mxu3 %v412_v22  ;;  %1178 = vrot.lane.b32.xlu1 %v3304_v5, %s3169_s30  ;;  %v475_v25 = vpop.permute.xlu0 %474 }
  0xab   : > { %1264 = vrot.lane.b32.xlu2 %v3297_v2, %s3170_s5  ;;  %v320_v26 = vpop.permute.xlu1 %319  ;;  %v481_v27 = vsel %vm478_vm3, %v3345_v8, %v475_v25  ;;  %v653_v33 = vpop.permute.xlu2 %652 }
  0xac   : > { %v493_v28 = vsel %vm338_vm1, %v481_v27, 0  ;;  %v330_v29 = vsel %vm329_vm0, %v320_v26, %v322_v7  ;;  %vm1622_vm0 = vcmask 64512  }
  0xad   : > { %v340_v31 = vsel %vm338_vm1, %v330_v29, 0  ;;  %531 = vmatpush.bf16.msra.mxu2 %v493_v28 }
  0xae   : > { %358 = vmatpush.bf16.msra.mxu0 %v340_v31 }
  0xb0   : > { %2819 = vmatmul.msk.bf16.vlgmr.msrb.gmra.mxu1 %vm334_vm2, %v316_v32  ;;  %1266 = vrot.lane.b32.xlu0 %v3304_v5, %s3170_s5 }
  0xb1   : > { %2814 = vmatmul.msk.bf16.vlgmr.msra.gmra.mxu0 %vm334_vm2, %v2813_v14 }
  0xb2   : > { %421 = vmatpush.bf16.msrb.mxu0 %v406_v30  ;;  %1174 = vrot.lane.b32.xlu1 %v3302_v4, %s3169_s30  ;;  %v471_v34 = vpop.permute.xlu0 %470  ;;  %s3185_s30 = smov 34  }
  0xb3   : > { %1260 = vrot.lane.b32.xlu2 %v3299_v3, %s3170_s5  ;;  %v480_v35 = vsel %vm478_vm3, %v471_v34, %v3345_v8  ;;  %v479_v36 = vsel %vm478_vm3, %v469_v9, %v471_v34  ;;  %v477_v37 = vpop.permute.xlu1 %476  ;;  %v3418_v45 = vpop.permute.xlu2 %736 }
  0xb4   : > { %v490_v38 = vsel %vm338_vm1, %v480_v35, 0  ;;  %v487_v39 = vsel %vm338_vm1, %v479_v36, 0  ;;  %v482_v40 = vsel %vm478_vm3, %v475_v25, %v477_v37  ;;  %v2837_v37 = vld [vmem:[%s3993_s2 + $0x14] sm:$0xf]  ;;  %vm1710_vm3 = vcmask 56320  }
  0xb5   : > { %v496_v41 = vsel %vm338_vm1, %v482_v40, 0  ;;  %518 = vmatpush.bf16.msra.mxu1 %v490_v38 }
  0xb6   : > { %505 = vmatpush.bf16.msra.mxu0 %v487_v39  ;;  %544 = vmatpush.bf16.msra.mxu3 %v496_v41 }
  0xb8   : > { %2820 = vmatmul.msk.bf16.vlgmr.msrb.gmra.mxu2 %vm334_vm2, %v316_v32  ;;  %1262 = vrot.lane.b32.xlu0 %v3302_v4, %s3170_s5 }
  0xb9   : > { %2821 = vmatmul.msk.bf16.vlgmr.msrb.gmra.mxu3 %vm334_vm2, %v316_v32 }
  0xba   : > { %1268 = vrot.lane.b32.xlu1 %v3308_v6, %s3170_s5  ;;  %v565_v42 = vpop.permute.xlu0 %564  ;;  %s3180_s5 = smov 46  }
  0xbb   : > { %1354 = vrot.lane.b32.xlu2 %v3304_v5, %s3171_s26  ;;  %v561_v43 = vpop.permute.xlu1 %560  ;;  %v570_v44 = vsel %vm566_vm4, %v3360_v15, %v565_v42  ;;  %v733_v56 = vpop.permute.xlu2 %732 }
  0xbc   : > { %v569_v46 = vsel %vm566_vm4, %v561_v43, %v3360_v15  ;;  %v568_v47 = vsel %vm566_vm4, %v559_v24, %v561_v43  ;;  %v584_v48 = vsel %vm338_vm1, %v570_v44, 0 }
  0xbd   : > { %v581_v49 = vsel %vm338_vm1, %v569_v46, 0  ;;  %v578_v51 = vsel %vm338_vm1, %v568_v47, 0  ;;  %632 = vmatpush.bf16.msrb.mxu3 %v584_v48 }
  0xbe   : > { %606 = vmatpush.bf16.msrb.mxu1 %v578_v51  ;;  %619 = vmatpush.bf16.msrb.mxu2 %v581_v49 }
  0xc0   : > { %2824 = vmatmul.msk.bf16.vlgmr.msra.gmra.mxu1 %vm334_vm2, %v2822_v50  ;;  %1356 = vrot.lane.b32.xlu0 %v3308_v6, %s3171_s26 }
  0xc1   : > { %2818 = vmatmul.msk.bf16.vlgmr.msrb.gmra.mxu0 %vm334_vm2, %v316_v32 }
  0xc2   : > { %1352 = vrot.lane.b32.xlu1 %v3297_v2, %s3171_s26  ;;  %v649_v52 = vpop.permute.xlu0 %648 }
  0xc3   : > { %1350 = vrot.lane.b32.xlu2 %v3302_v4, %s3171_s26  ;;  %v557_v53 = vpop.permute.xlu1 %556  ;;  %v827_v0 = vpop.permute.xlu2 %826 }
  0xc4   : > { %v567_v54 = vsel %vm566_vm4, %v557_v53, %v559_v24  ;;  %vm1798_vm4 = vcmask 48128  }
  0xc5   : > { %v575_v55 = vsel %vm338_vm1, %v567_v54, 0 }
  0xc6   : > { %593 = vmatpush.bf16.msrb.mxu0 %v575_v55 }
  0xc8   : > { %2825 = vmatmul.msk.bf16.vlgmr.msra.gmra.mxu2 %vm334_vm2, %v2822_v50  ;;  %1440 = vrot.lane.b32.xlu0 %v3297_v2, %s3172_s12 }
  0xc9   : > { %2826 = vmatmul.msk.bf16.vlgmr.msra.gmra.mxu3 %vm334_vm2, %v2822_v50 }
  0xca   : > { %1348 = vrot.lane.b32.xlu1 %v3299_v3, %s3171_s26  ;;  %v645_v57 = vpop.permute.xlu0 %644  ;;  %s3181_s26 = smov 45  }
  0xcb   : > { %1444 = vrot.lane.b32.xlu2 %v3308_v6, %s3172_s12  ;;  %v651_v58 = vpop.permute.xlu1 %650  ;;  %v823_v14 = vpop.permute.xlu2 %822 }
  0xcc   : > { %v657_v59 = vsel %vm654_vm5, %v649_v52, %v651_v58  ;;  %v658_v60 = vsel %vm654_vm5, %v651_v58, %v653_v33 }
  0xcd   : > { %v669_v61 = vsel %vm338_vm1, %v657_v59, 0  ;;  %v672_v63 = vsel %vm338_vm1, %v658_v60, 0 }
  0xce   : > { %707 = vmatpush.bf16.msra.mxu2 %v669_v61  ;;  %720 = vmatpush.bf16.msra.mxu3 %v672_v63 }
  0xd0   : > { %2829 = vmatmul.msk.bf16.vlgmr.msrb.gmra.mxu1 %vm334_vm2, %v2827_v62  ;;  %1436 = vrot.lane.b32.xlu0 %v3299_v3, %s3172_s12 }
  0xd1   : > { %2823 = vmatmul.msk.bf16.vlgmr.msra.gmra.mxu0 %vm334_vm2, %v2822_v50  ;;  %v2842_v50 = vld [vmem:[%s3993_s2 + $0x18] sm:$0xf] }
  0xd2   : > { %1442 = vrot.lane.b32.xlu1 %v3304_v5, %s3172_s12  ;;  %v739_v1 = vpop.permute.xlu0 %738 }
  0xd3   : > { %1528 = vrot.lane.b32.xlu2 %v3297_v2, %s3173_s23  ;;  %v647_v7 = vpop.permute.xlu1 %646  ;;  %v745_v8 = vsel %vm742_vm6, %v3418_v45, %v739_v1  ;;  %v917_v24 = vpop.permute.xlu2 %916 }
  0xd4   : > { %v655_v9 = vsel %vm654_vm5, %v645_v57, %v647_v7  ;;  %v656_v10 = vsel %vm654_vm5, %v647_v7, %v649_v52  ;;  %v757_v13 = vsel %vm338_vm1, %v745_v8, 0  ;;  %v2847_v7 = vld [vmem:[%s3993_s2 + $0x1c] sm:$0xf]  ;;  %vm1886_vm5 = vcmask 457728  }
  0xd5   : > { %v663_v11 = vsel %vm338_vm1, %v655_v9, 0  ;;  %v666_v12 = vsel %vm338_vm1, %v656_v10, 0 }
  0xd6   : > { %694 = vmatpush.bf16.msra.mxu1 %v666_v12  ;;  %681 = vmatpush.bf16.msra.mxu0 %v663_v11 }
  0xd8   : > { %2830 = vmatmul.msk.bf16.vlgmr.msrb.gmra.mxu2 %vm334_vm2, %v2827_v62  ;;  %1530 = vrot.lane.b32.xlu0 %v3304_v5, %s3173_s23 }
  0xd9   : > { %2831 = vmatmul.msk.bf16.vlgmr.msrb.gmra.mxu3 %vm334_vm2, %v2827_v62  ;;  %795 = vmatpush.bf16.msrb.mxu2 %v757_v13 }
  0xda   : > { %v735_v15 = vpop.permute.xlu0 %734  ;;  %1438 = vrot.lane.b32.xlu1 %v3302_v4, %s3172_s12  ;;  %s3182_s12 = smov 44  }
  0xdb   : > { %1524 = vrot.lane.b32.xlu2 %v3299_v3, %s3173_s23  ;;  %v744_v16 = vsel %vm742_vm6, %v735_v15, %v3418_v45  ;;  %v741_v17 = vpop.permute.xlu1 %740  ;;  %v743_v18 = vsel %vm742_vm6, %v733_v56, %v735_v15  ;;  %v1001_v35 = vpop.permute.xlu2 %1000 }
  0xdc   : > { %v754_v19 = vsel %vm338_vm1, %v744_v16, 0  ;;  %v746_v20 = vsel %vm742_vm6, %v739_v1, %v741_v17  ;;  %v751_v23 = vsel %vm338_vm1, %v743_v18, 0  ;;  %vm1974_vm6 = vcmask 449536  }
  0xdd   : > { %v760_v22 = vsel %vm338_vm1, %v746_v20, 0  ;;  %782 = vmatpush.bf16.msrb.mxu1 %v754_v19 }
  0xde   : > { %808 = vmatpush.bf16.msrb.mxu3 %v760_v22 }
  0xe0   : > { %2834 = vmatmul.msk.bf16.vlgmr.msra.gmra.mxu1 %vm334_vm2, %v2832_v21  ;;  %1526 = vrot.lane.b32.xlu0 %v3302_v4, %s3173_s23 }
  0xe1   : > { %2828 = vmatmul.msk.bf16.vlgmr.msrb.gmra.mxu0 %vm334_vm2, %v2827_v62 }
  0xe2   : > { %769 = vmatpush.bf16.msrb.mxu0 %v751_v23  ;;  %v829_v25 = vpop.permute.xlu0 %828  ;;  %1532 = vrot.lane.b32.xlu1 %v3308_v6, %s3173_s23  ;;  %s3183_s23 = smov 36  }
  0xe3   : > { %v825_v26 = vpop.permute.xlu1 %824  ;;  %1618 = vrot.lane.b32.xlu2 %v3304_v5, %s3174_s18  ;;  %v834_v29 = vsel %vm830_vm7, %v827_v0, %v829_v25  ;;  %v997_v43 = vpop.permute.xlu2 %996 }
  0xe4   : > { %v833_v27 = vsel %vm830_vm7, %v825_v26, %v827_v0  ;;  %v832_v28 = vsel %vm830_vm7, %v823_v14, %v825_v26  ;;  %v848_v32 = vsel %vm338_vm1, %v834_v29, 0 }
  0xe5   : > { %v842_v30 = vsel %vm338_vm1, %v832_v28, 0  ;;  %v845_v31 = vsel %vm338_vm1, %v833_v27, 0  ;;  %v3585_v27 = vld.sshfl [vmem:[#allocation1 + $0x8] sm:$0xff pattern:$0x73625140] }
  0xe6   : > { %870 = vmatpush.bf16.msra.mxu1 %v842_v30 }
  0xe8   : > { %2835 = vmatmul.msk.bf16.vlgmr.msra.gmra.mxu2 %vm334_vm2, %v2832_v21  ;;  %1620 = vrot.lane.b32.xlu0 %v3308_v6, %s3174_s18 }
  0xe9   : > { %2836 = vmatmul.msk.bf16.vlgmr.msra.gmra.mxu3 %vm334_vm2, %v2832_v21  ;;  %883 = vmatpush.bf16.msra.mxu2 %v845_v31 }
  0xea   : > { %896 = vmatpush.bf16.msra.mxu3 %v848_v32  ;;  %v913_v33 = vpop.permute.xlu0 %912  ;;  %1616 = vrot.lane.b32.xlu1 %v3297_v2, %s3174_s18 }
  0xeb   : > { %v821_v34 = vpop.permute.xlu1 %820  ;;  %1614 = vrot.lane.b32.xlu2 %v3302_v4, %s3174_s18  ;;  %v1091_v53 = vpop.permute.xlu2 %1090 }
  0xec   : > { %v831_v36 = vsel %vm830_vm7, %v821_v34, %v823_v14  ;;  %vm2062_vm7 = vcmask 441344  }
  0xed   : > { %v839_v38 = vsel %vm338_vm1, %v831_v36, 0 }
  0xf0   : > { %2839 = vmatmul.msk.bf16.vlgmr.msrb.gmra.mxu1 %vm334_vm2, %v2837_v37  ;;  %1704 = vrot.lane.b32.xlu0 %v3297_v2, %s3175_s6 }
  0xf1   : > { %2833 = vmatmul.msk.bf16.vlgmr.msra.gmra.mxu0 %vm334_vm2, %v2832_v21  ;;  %v2852_v21 = vld [vmem:[%s3993_s2 + $0x20] sm:$0xf] }
  0xf2   : > { %857 = vmatpush.bf16.msra.mxu0 %v839_v38  ;;  %v909_v39 = vpop.permute.xlu0 %908  ;;  %1612 = vrot.lane.b32.xlu1 %v3299_v3, %s3174_s18  ;;  %s3184_s18 = smov 35  }
  0xf3   : > { %v915_v40 = vpop.permute.xlu1 %914  ;;  %1708 = vrot.lane.b32.xlu2 %v3308_v6, %s3175_s6  ;;  %v1087_v62 = vpop.permute.xlu2 %1086 }
  0xf4   : > { %v921_v41 = vsel %vm918_vm8, %v913_v33, %v915_v40  ;;  %v922_v42 = vsel %vm918_vm8, %v915_v40, %v917_v24 }
  0xf5   : > { %v933_v44 = vsel %vm338_vm1, %v921_v41, 0  ;;  %v936_v45 = vsel %vm338_vm1, %v922_v42, 0  ;;  %v2857_v42 = vld [vmem:[%s3993_s2 + $0x24] sm:$0xf] }
  0xf8   : > { %2840 = vmatmul.msk.bf16.vlgmr.msrb.gmra.mxu2 %vm334_vm2, %v2837_v37  ;;  %1700 = vrot.lane.b32.xlu0 %v3299_v3, %s3175_s6 }
  0xf9   : > { %2841 = vmatmul.msk.bf16.vlgmr.msrb.gmra.mxu3 %vm334_vm2, %v2837_v37  ;;  %971 = vmatpush.bf16.msrb.mxu2 %v933_v44 }
  0xfa   : > { %984 = vmatpush.bf16.msrb.mxu3 %v936_v45  ;;  %v1003_v46 = vpop.permute.xlu0 %1002  ;;  %1706 = vrot.lane.b32.xlu1 %v3304_v5, %s3175_s6 }
  0xfb   : > { %v911_v47 = vpop.permute.xlu1 %910  ;;  %1792 = vrot.lane.b32.xlu2 %v3297_v2, %s3176_s9  ;;  %v1009_v55 = vsel %vm1006_vm9, %v1001_v35, %v1003_v46 }
  0xfc   : > { %v919_v48 = vsel %vm918_vm8, %v909_v39, %v911_v47  ;;  %v920_v49 = vsel %vm918_vm8, %v911_v47, %v913_v33  ;;  %v1021_v60 = vsel %vm338_vm1, %v1009_v55, 0  ;;  %v1181_v14 = vpop.permute.xlu2 %1180  ;;  %vm2150_vm8 = vcmask 375808  }
  0xfd   : > { %v930_v51 = vsel %vm338_vm1, %v920_v49, 0  ;;  %v927_v52 = vsel %vm338_vm1, %v919_v48, 0 }
  0xfe   : > { %958 = vmatpush.bf16.msrb.mxu1 %v930_v51 }
 0x100   : > { %2844 = vmatmul.msk.bf16.vlgmr.msra.gmra.mxu1 %vm334_vm2, %v2842_v50  ;;  %1794 = vrot.lane.b32.xlu0 %v3304_v5, %s3176_s9 }
 0x101   : > { %2838 = vmatmul.msk.bf16.vlgmr.msrb.gmra.mxu0 %vm334_vm2, %v2837_v37 }
 0x102   : > { %945 = vmatpush.bf16.msrb.mxu0 %v927_v52  ;;  %v999_v54 = vpop.permute.xlu0 %998  ;;  %1702 = vrot.lane.b32.xlu1 %v3302_v4, %s3175_s6 }
 0x103   : > { %v1008_v56 = vsel %vm1006_vm9, %v999_v54, %v1001_v35  ;;  %v1005_v57 = vpop.permute.xlu1 %1004  ;;  %1788 = vrot.lane.b32.xlu2 %v3299_v3, %s3176_s9  ;;  %v1007_v0 = vsel %vm1006_vm9, %v997_v43, %v999_v54 }
 0x104   : > { %v1018_v58 = vsel %vm338_vm1, %v1008_v56, 0  ;;  %v1010_v59 = vsel %vm1006_vm9, %v1003_v46, %v1005_v57  ;;  %v1015_v9 = vsel %vm338_vm1, %v1007_v0, 0  ;;  %vm2238_vm9 = vcmask 367616  }
 0x105   : > { %1046 = vmatpush.bf16.msra.mxu1 %v1018_v58  ;;  %v1024_v61 = vsel %vm338_vm1, %v1010_v59, 0  ;;  %v1265_v22 = vpop.permute.xlu2 %1264 }
 0x108   : > { %2845 = vmatmul.msk.bf16.vlgmr.msra.gmra.mxu2 %vm334_vm2, %v2842_v50  ;;  %1790 = vrot.lane.b32.xlu0 %v3302_v4, %s3176_s9 }
 0x109   : > { %2846 = vmatmul.msk.bf16.vlgmr.msra.gmra.mxu3 %vm334_vm2, %v2842_v50  ;;  %1059 = vmatpush.bf16.msra.mxu2 %v1021_v60 }
 0x10a   : > { %1072 = vmatpush.bf16.msra.mxu3 %v1024_v61  ;;  %v1093_v3 = vpop.permute.xlu0 %1092  ;;  %1796 = vrot.lane.b32.xlu1 %v3308_v6, %s3176_s9 }
 0x10b   : > { %v1089_v63 = vpop.permute.xlu1 %1088  ;;  %1882 = vrot.lane.b32.xlu2 %v3308_v6, %s3177_s11  ;;  %v1098_v13 = vsel %vm1094_vm10, %v1091_v53, %v1093_v3 }
 0x10c   : > { %v1096_v1 = vsel %vm1094_vm10, %v1087_v62, %v1089_v63  ;;  %v1097_v11 = vsel %vm1094_vm10, %v1089_v63, %v1091_v53  ;;  %v1112_v16 = vsel %vm338_vm1, %v1098_v13, 0 }
 0x10d   : > { %v1106_v8 = vsel %vm338_vm1, %v1096_v1, 0  ;;  %v1109_v15 = vsel %vm338_vm1, %v1097_v11, 0  ;;  %v1261_v33 = vpop.permute.xlu2 %1260 }
 0x110   : > { %2849 = vmatmul.msk.bf16.vlgmr.msrb.gmra.mxu1 %vm334_vm2, %v2847_v7  ;;  %1884 = vrot.lane.b32.xlu0 %v3585_v27, %s3177_s11 }
 0x111   : > { %2843 = vmatmul.msk.bf16.vlgmr.msra.gmra.mxu0 %vm334_vm2, %v2842_v50  ;;  %1134 = vmatpush.bf16.msrb.mxu1 %v1106_v8 }
 0x112   : > { %1033 = vmatpush.bf16.msra.mxu0 %v1015_v9  ;;  %v1177_v10 = vpop.permute.xlu0 %1176  ;;  %1880 = vrot.lane.b32.xlu1 %v3304_v5, %s3177_s11 }
 0x113   : > { %v1085_v12 = vpop.permute.xlu1 %1084  ;;  %1878 = vrot.lane.b32.xlu2 %v3297_v2, %s3177_s11 }
 0x114   : > { %v1095_v19 = vsel %vm1094_vm10, %v1085_v12, %v1087_v62  ;;  %vm2326_vm10 = vcmask 359424  }
 0x115   : > { %v1103_v23 = vsel %vm338_vm1, %v1095_v19, 0  ;;  %v1355_v46 = vpop.permute.xlu2 %1354 }
 0x118   : > { %2850 = vmatmul.msk.bf16.vlgmr.msrb.gmra.mxu2 %vm334_vm2, %v2847_v7  ;;  %1968 = vrot.lane.b32.xlu0 %v3304_v5, %s3178_s24 }
 0x119   : > { %2851 = vmatmul.msk.bf16.vlgmr.msrb.gmra.mxu3 %vm334_vm2, %v2847_v7  ;;  %1147 = vmatpush.bf16.msrb.mxu2 %v1109_v15 }
 0x11a   : > { %1160 = vmatpush.bf16.msrb.mxu3 %v1112_v16  ;;  %v1173_v17 = vpop.permute.xlu0 %1172  ;;  %1876 = vrot.lane.b32.xlu1 %v3302_v4, %s3177_s11 }
 0x11b   : > { %1972 = vrot.lane.b32.xlu2 %v3585_v27, %s3178_s24 }
 0x11c   : > { %v1179_v18 = vpop.permute.xlu1 %1178 }
 0x11d   : > { %v373_v20 = vpop.f32.mrf.mxu1  ;;  %v1185_v25 = vsel %vm1182_vm11, %v1177_v10, %v1179_v18  ;;  %v1186_v28 = vsel %vm1182_vm11, %v1179_v18, %v1181_v14  ;;  %v1351_v58 = vpop.permute.xlu2 %1350 }
 0x11e   : > { %v1197_v32 = vsel %vm338_vm1, %v1185_v25, 0  ;;  %v1200_v34 = vsel %vm338_vm1, %v1186_v28, 0 }
 0x120   : > { %2854 = vmatmul.msk.bf16.vlgmr.msra.gmra.mxu1 %vm334_vm2, %v2852_v21  ;;  %1964 = vrot.lane.b32.xlu0 %v3302_v4, %s3178_s24 }
 0x121   : > { %2848 = vmatmul.msk.bf16.vlgmr.msrb.gmra.mxu0 %vm334_vm2, %v2847_v7  ;;  %v2862_v7 = vld [vmem:[%s3993_s2 + $0x28] sm:$0xf] }
 0x122   : > { %1121 = vmatpush.bf16.msrb.mxu0 %v1103_v23  ;;  %v1267_v24 = vpop.permute.xlu0 %1266  ;;  %1970 = vrot.lane.b32.xlu1 %v3308_v6, %s3178_s24 }
 0x123   : > { %2056 = vrot.lane.b32.xlu2 %v3304_v5, %s3179_s27  ;;  %v1273_v49 = vsel %vm1270_vm12, %v1265_v22, %v1267_v24 }
 0x124   : > { %v1175_v26 = vpop.permute.xlu1 %1174  ;;  %v1285_v56 = vsel %vm338_vm1, %v1273_v49, 0 }
 0x125   : > { %v1184_v29 = vsel %vm1182_vm11, %v1175_v26, %v1177_v10  ;;  %v375_v30 = vpop.f32.mrf.mxu1  ;;  %v1183_v40 = vsel %vm1182_vm11, %v1173_v17, %v1175_v26  ;;  %v1445_v19 = vpop.permute.xlu2 %1444  ;;  %vm2414_vm11 = vcmask 293888  }
 0x126   : > { %v1194_v31 = vsel %vm338_vm1, %v1184_v29, 0  ;;  %v1191_v47 = vsel %vm338_vm1, %v1183_v40, 0 }
 0x127   : > { %1222 = vmatpush.bf16.msra.mxu1 %v1194_v31 }
 0x128   : > { %2855 = vmatmul.msk.bf16.vlgmr.msra.gmra.mxu2 %vm334_vm2, %v2852_v21  ;;  %2058 = vrot.lane.b32.xlu0 %v3308_v6, %s3179_s27 }
 0x129   : > { %2856 = vmatmul.msk.bf16.vlgmr.msra.gmra.mxu3 %vm334_vm2, %v2852_v21  ;;  %1235 = vmatpush.bf16.msra.mxu2 %v1197_v32 }
 0x12a   : > { %1248 = vmatpush.bf16.msra.mxu3 %v1200_v34  ;;  %v1263_v35 = vpop.permute.xlu0 %1262  ;;  %1966 = vrot.lane.b32.xlu1 %v3297_v2, %s3178_s24 }
 0x12b   : > { %v386_v36 = vpop.f32.mrf.mxu2  ;;  %v1272_v37 = vsel %vm1270_vm12, %v1263_v35, %v1265_v22  ;;  %2052 = vrot.lane.b32.xlu2 %v3302_v4, %s3179_s27  ;;  %v1271_v63 = vsel %vm1270_vm12, %v1261_v33, %v1263_v35  ;;  %v2867_v33 = vld [vmem:[%s3993_s2 + $0x2c] sm:$0xf] }
 0x12c   : > { %v1269_v38 = vpop.permute.xlu1 %1268  ;;  %v399_v39 = vpop.f32.mrf.mxu3  ;;  %v1282_v45 = vsel %vm338_vm1, %v1272_v37, 0  ;;  %v1279_v13 = vsel %vm338_vm1, %v1271_v63, 0 }
 0x12d   : > { %v436_v41 = vpop.f32.mrf.mxu1  ;;  %v1274_v52 = vsel %vm1270_vm12, %v1267_v24, %v1269_v38  ;;  %v1529_v35 = vpop.permute.xlu2 %1528  ;;  %vm2502_vm12 = vcmask 285696  }
 0x12e   : > { %v437_v43 = vadd.f32 %v436_v41, %v373_v20  ;;  %v360_v44 = vpop.f32.mrf.mxu0  ;;  %v1288_v57 = vsel %vm338_vm1, %v1274_v52, 0 }
 0x130   : > { %2859 = vmatmul.msk.bf16.vlgmr.msrb.gmra.mxu1 %vm334_vm2, %v2857_v42  ;;  %2054 = vrot.lane.b32.xlu0 %v3297_v2, %s3179_s27 }
 0x131   : > { %2853 = vmatmul.msk.bf16.vlgmr.msra.gmra.mxu0 %vm334_vm2, %v2852_v21  ;;  %1310 = vmatpush.bf16.msrb.mxu1 %v1282_v45 }
 0x132   : > { %1209 = vmatpush.bf16.msra.mxu0 %v1191_v47  ;;  %2060 = vrot.lane.b32.xlu1 %v3585_v27, %s3179_s27  ;;  %v1357_v53 = vpop.permute.xlu0 %1356 }
 0x133   : > { %v388_v48 = vpop.f32.mrf.mxu2  ;;  %2146 = vrot.lane.b32.xlu2 %v3308_v6, %s3180_s5  ;;  %v1362_v18 = vsel %vm1358_vm13, %v1355_v46, %v1357_v53 }
 0x134   : > { %v1353_v50 = vpop.permute.xlu1 %1352  ;;  %v401_v51 = vpop.f32.mrf.mxu3  ;;  %v1376_v24 = vsel %vm338_vm1, %v1362_v18, 0 }
 0x135   : > { %v438_v54 = vpop.f32.mrf.mxu1  ;;  %v1360_v60 = vsel %vm1358_vm13, %v1351_v58, %v1353_v50  ;;  %v1361_v15 = vsel %vm1358_vm13, %v1353_v50, %v1355_v46  ;;  %v1525_v47 = vpop.permute.xlu2 %1524 }
 0x136   : > { %v362_v55 = vpop.f32.mrf.mxu0  ;;  %v1370_v11 = vsel %vm338_vm1, %v1360_v60, 0  ;;  %v1373_v23 = vsel %vm338_vm1, %v1361_v15, 0  ;;  %v2872_v60 = vld [vmem:[%s3993_s2 + $0x30] sm:$0xf] }
 0x138   : > { %2860 = vmatmul.msk.bf16.vlgmr.msrb.gmra.mxu2 %vm334_vm2, %v2857_v42  ;;  %2148 = vrot.lane.b32.xlu0 %v3585_v27, %s3180_s5 }
 0x139   : > { %2861 = vmatmul.msk.bf16.vlgmr.msrb.gmra.mxu3 %vm334_vm2, %v2857_v42  ;;  %1323 = vmatpush.bf16.msrb.mxu2 %v1285_v56 }
 0x13a   : > { %1336 = vmatpush.bf16.msrb.mxu3 %v1288_v57  ;;  %2144 = vrot.lane.b32.xlu1 %v3304_v5, %s3180_s5  ;;  %v1441_v8 = vpop.permute.xlu0 %1440 }
 0x13b   : > { %v449_v59 = vpop.f32.mrf.mxu2  ;;  %2142 = vrot.lane.b32.xlu2 %v3297_v2, %s3180_s5 }
 0x13c   : > { %v1349_v61 = vpop.permute.xlu1 %1348  ;;  %v450_v62 = vadd.f32 %v449_v59, %v386_v36  ;;  %v462_v3 = vpop.f32.mrf.mxu3 }
 0x13d   : > { %v463_v0 = vadd.f32 %v462_v3, %v399_v39  ;;  %v520_v1 = vpop.f32.mrf.mxu1  ;;  %v1359_v29 = vsel %vm1358_vm13, %v1349_v61, %v1351_v58  ;;  %v1619_v63 = vpop.permute.xlu2 %1618  ;;  %vm2590_vm13 = vcmask 277504  }
 0x13e   : > { %v551_v9 = vadd.f32 %v520_v1, %v437_v43  ;;  %v423_v10 = vpop.f32.mrf.mxu0  ;;  %v1367_v41 = vsel %vm338_vm1, %v1359_v29, 0 }
 0x13f   : > { %v424_v12 = vadd.f32 %v423_v10, %v360_v44 }
 0x140   : > { %2864 = vmatmul.msk.bf16.vlgmr.msra.gmra.mxu1 %vm334_vm2, %v2862_v7  ;;  %2232 = vrot.lane.b32.xlu0 %v3304_v5, %s3181_s26 }
 0x141   : > { %2858 = vmatmul.msk.bf16.vlgmr.msrb.gmra.mxu0 %vm334_vm2, %v2857_v42  ;;  %1398 = vmatpush.bf16.msra.mxu1 %v1370_v11 }
 0x142   : > { %1297 = vmatpush.bf16.msrb.mxu0 %v1279_v13  ;;  %2140 = vrot.lane.b32.xlu1 %v3302_v4, %s3180_s5  ;;  %v1437_v21 = vpop.permute.xlu0 %1436  ;;  %s261_s5 = sand.u32 1, %s3134_s16  }
 0x143   : > { %v451_v14 = vpop.f32.mrf.mxu2  ;;  %2236 = vrot.lane.b32.xlu2 %v3585_v27, %s3181_s26  ;;  %s2807_s6 = sshll.u32 %s261_s5, 5 }
 0x144   : > { %v1443_v16 = vpop.permute.xlu1 %1442  ;;  %v464_v17 = vpop.f32.mrf.mxu3  ;;  %s3939_s9 = scalar_lea.vmem [#allocation2], %s2807_s6  ;;  %s3084_s6 = scalar_lea.hbm %s3995_s4, 128 }
 0x145   : > { %v522_v20 = vpop.f32.mrf.mxu1  ;;  %v1449_v43 = vsel %vm1446_vm14, %v1441_v8, %v1443_v16  ;;  %v1450_v45 = vsel %vm1446_vm14, %v1443_v16, %v1445_v19  ;;  %v1615_v18 = vpop.permute.xlu2 %1614 }
 0x146   : > { %v425_v22 = vpop.f32.mrf.mxu0  ;;  %v1461_v49 = vsel %vm338_vm1, %v1449_v43, 0  ;;  %v1464_v50 = vsel %vm338_vm1, %v1450_v45, 0 }
 0x148   : > { %2865 = vmatmul.msk.bf16.vlgmr.msra.gmra.mxu2 %vm334_vm2, %v2862_v7  ;;  %2228 = vrot.lane.b32.xlu0 %v3302_v4, %s3181_s26 }
 0x149   : > { %2866 = vmatmul.msk.bf16.vlgmr.msra.gmra.mxu3 %vm334_vm2, %v2862_v7  ;;  %1411 = vmatpush.bf16.msra.mxu2 %v1373_v23 }
 0x14a   : > { %1424 = vmatpush.bf16.msra.mxu3 %v1376_v24  ;;  %2234 = vrot.lane.b32.xlu1 %v3308_v6, %s3181_s26  ;;  %v1531_v39 = vpop.permute.xlu0 %1530 }
 0x14b   : > { %v533_v25 = vpop.f32.mrf.mxu2  ;;  %2320 = vrot.lane.b32.xlu2 %v3304_v5, %s3182_s12 }
 0x14c   : > { %v552_v26 = vadd.f32 %v533_v25, %v450_v62  ;;  %v546_v28 = vpop.f32.mrf.mxu3  ;;  %v1439_v30 = vpop.permute.xlu1 %1438  ;;  %v2877_v25 = vld [vmem:[%s3993_s2 + $0x34] sm:$0xf] }
 0x14d   : > { %v553_v31 = vadd.f32 %v546_v28, %v463_v0  ;;  %v608_v32 = vpop.f32.mrf.mxu1  ;;  %v1448_v34 = vsel %vm1446_vm14, %v1439_v30, %v1441_v8  ;;  %v1447_v57 = vsel %vm1446_vm14, %v1437_v21, %v1439_v30 }
 0x14e   : > { %v507_v36 = vpop.f32.mrf.mxu0  ;;  %v639_v37 = vadd.f32 %v608_v32, %v551_v9  ;;  %v1458_v38 = vsel %vm338_vm1, %v1448_v34, 0  ;;  %v1455_v1 = vsel %vm338_vm1, %v1447_v57, 0  ;;  %v1537_v9 = vsel %vm1534_vm15, %v1529_v35, %v1531_v39  ;;  %v3721_v34 = vld.sshfl [vmem:[#allocation1] sm:$0xff pattern:$0x73625140] }
 0x14f   : > { %v550_v40 = vadd.f32 %v507_v36, %v424_v12  ;;  %v1549_v15 = vsel %vm338_vm1, %v1537_v9, 0 }
 0x150   : > { %2869 = vmatmul.msk.bf16.vlgmr.msrb.gmra.mxu1 %vm334_vm2, %v2867_v33  ;;  %2322 = vrot.lane.b32.xlu0 %v3308_v6, %s3182_s12 }
 0x151   : > { %2863 = vmatmul.msk.bf16.vlgmr.msra.gmra.mxu0 %vm334_vm2, %v2862_v7  ;;  %1486 = vmatpush.bf16.msrb.mxu1 %v1458_v38 }
 0x152   : > { %1385 = vmatpush.bf16.msra.mxu0 %v1367_v41  ;;  %2230 = vrot.lane.b32.xlu1 %v3297_v2, %s3181_s26  ;;  %v1527_v52 = vpop.permute.xlu0 %1526  ;;  %s2949_s26 = sshll.u32 %s3146_s19, 3 }
 0x153   : > { %v535_v42 = vpop.f32.mrf.mxu2  ;;  %v1536_v54 = vsel %vm1534_vm15, %v1527_v52, %v1529_v35  ;;  %2316 = vrot.lane.b32.xlu2 %v3302_v4, %s3182_s12  ;;  %v1535_v22 = vsel %vm1534_vm15, %v1525_v47, %v1527_v52  ;;  %s2696_s10 = sadd.s32 %s2949_s26, %s3284_s8  ;;  %s2700_s8 = sshll.u32 %s3939_s9, 4  ;;  %s2701_s8 = int_to_ptr.vmem [resolvable:$true] %s2700_s8 }
 0x154   : > { %v548_v44 = vpop.f32.mrf.mxu3  ;;  %v1533_v51 = vpop.permute.xlu1 %1532  ;;  %v1546_v3 = vsel %vm338_vm1, %v1536_v54, 0  ;;  %v1543_v32 = vsel %vm338_vm1, %v1535_v22, 0  ;;  %s2950_s11 = sshll.u32 %s2696_s10, 3 }
 0x155   : > { %v610_v46 = vpop.f32.mrf.mxu1  ;;  %v1538_v11 = vsel %vm1534_vm15, %v1531_v39, %v1533_v51  ;;  %v1709_v39 = vpop.permute.xlu2 %1708  ;;  %s2698_s13 = scalar_lea.hbm %s3995_s4, %s2950_s11 }
 0x156   : > { %v509_v48 = vpop.f32.mrf.mxu0  ;;  %v1552_v16 = vsel %vm338_vm1, %v1538_v11, 0  ;;  %s2702_s14 = sshll.u32 %s2698_s13, 4  ;;  %s2703_s14 = int_to_ptr.hbm [resolvable:$true] %s2702_s14 }
 0x157   : > { %s3078_s24 = sshra.s32 %s2703_s14, 4  ;;  %s3079_s24 = int_to_ptr.hbm [resolvable:$true] %s3078_s24 }
 0x158   : > { %2870 = vmatmul.msk.bf16.vlgmr.msrb.gmra.mxu2 %vm334_vm2, %v2867_v33  ;;  %2318 = vrot.lane.b32.xlu0 %v3297_v2, %s3182_s12  ;;  %s3080_s27 = scalar_lea.hbm %s3079_s24, 32  ;;  %p3085_p5 = scmp.lt.s32.totalorder %s3079_s24, %s3995_s4 }
 0x159   : > { %2871 = vmatmul.msk.bf16.vlgmr.msrb.gmra.mxu3 %vm334_vm2, %v2867_v33  ;;  %1499 = vmatpush.bf16.msrb.mxu2 %v1461_v49  ;;  %p3081_p1 = scmp.ne.s32.totalorder %s3079_s24, %s3080_s27  ;;  %p3086_p6 = scmp.lt.s32.totalorder %s3084_s6, %s3080_s27 }
 0x15a   : > { %1512 = vmatpush.bf16.msrb.mxu3 %v1464_v50  ;;  %2324 = vrot.lane.b32.xlu1 %v3585_v27, %s3182_s12  ;;  %v1621_v12 = vpop.permute.xlu0 %1620 }
 0x15b   : > { %v621_v53 = vpop.f32.mrf.mxu2  ;;  %2410 = vrot.lane.b32.xlu2 %v3308_v6, %s3183_s23  ;;  %v1626_v38 = vsel %vm1622_vm0, %v1619_v63, %v1621_v12  ;;  %p3082_p2 = pnand %p3081_p1, %p3263_p3  ;;  %p3087_p7 = por %p3086_p6, %p3085_p5 }
 0x15c   : > { %v640_v55 = vadd.f32 %v621_v53, %v552_v26  ;;  %v634_v56 = vpop.f32.mrf.mxu3  ;;  %v1617_v7 = vpop.permute.xlu1 %1616  ;;  %v1640_v44 = vsel %vm338_vm1, %v1626_v38, 0  ;;  %v2882_v53 = vld [vmem:[%s3993_s2 + $0x38] sm:$0xf] }
 0x15d   : > { %v641_v58 = vadd.f32 %v634_v56, %v553_v31  ;;  %v696_v59 = vpop.f32.mrf.mxu1  ;;  %v1624_v6 = vsel %vm1622_vm0, %v1615_v18, %v1617_v7  ;;  %v1625_v36 = vsel %vm1622_vm0, %v1617_v7, %v1619_v63  ;;  %v1793_v54 = vpop.permute.xlu2 %1792  ;;  %p3083_p4 = pneg %p3082_p2 }
 0x15e   : > { %v595_v61 = vpop.f32.mrf.mxu0  ;;  %v727_v62 = vadd.f32 %v696_v59, %v639_v37  ;;  %v1634_v30 = vsel %vm338_vm1, %v1624_v6, 0  ;;  %v1637_v43 = vsel %vm338_vm1, %v1625_v36, 0 }
 0x15f   : > { %v638_v0 = vadd.f32 %v595_v61, %v550_v40  ;;  %p3088_p9 = pnand %p3087_p7, %p3083_p4 }
 0x160   : > { %2874 = vmatmul.msk.bf16.vlgmr.msra.gmra.mxu1 %vm334_vm2, %v2872_v60  ;;  %2412 = vrot.lane.b32.xlu0 %v3585_v27, %s3183_s23 }
 0x161   : > { %2868 = vmatmul.msk.bf16.vlgmr.msrb.gmra.mxu0 %vm334_vm2, %v2867_v33  ;;  %1574 = vmatpush.bf16.msra.mxu1 %v1546_v3 }
 0x162   : > { %1473 = vmatpush.bf16.msrb.mxu0 %v1455_v1  ;;  %2408 = vrot.lane.b32.xlu1 %v3304_v5, %s3183_s23  ;;  %v1705_v26 = vpop.permute.xlu0 %1704 }
 0x163   : > { %v623_v8 = vpop.f32.mrf.mxu2  ;;  %2406 = vrot.lane.b32.xlu2 %v3297_v2, %s3183_s23 }
 0x164   : > { %v636_v10 = vpop.f32.mrf.mxu3  ;;  %v1613_v17 = vpop.permute.xlu1 %1612 }
 0x165   : > { %v698_v13 = vpop.f32.mrf.mxu1  ;;  %v1623_v50 = vsel %vm1622_vm0, %v1613_v17, %v1615_v18 }
 0x166   : > { %v597_v14 = vpop.f32.mrf.mxu0 }
 0x168   : > { %2875 = vmatmul.msk.bf16.vlgmr.msra.gmra.mxu2 %vm334_vm2, %v2872_v60  ;;  %2496 = vrot.lane.b32.xlu0 %v3304_v5, %s3184_s18 }
 0x169   : > { %2876 = vmatmul.msk.bf16.vlgmr.msra.gmra.mxu3 %vm334_vm2, %v2872_v60  ;;  %1587 = vmatpush.bf16.msra.mxu2 %v1549_v15 }
 0x16a   : > { %1600 = vmatpush.bf16.msra.mxu3 %v1552_v16  ;;  %2404 = vrot.lane.b32.xlu1 %v3302_v4, %s3183_s23  ;;  %v1701_v41 = vpop.permute.xlu0 %1700  ;;  %v2887_v16 = vld [vmem:[%s3993_s2 + $0x3c] sm:$0xf]  ;;  %s2685_s23 = scalar_lea.sflag [#allocation3], %s261_s5 }
 0x16b   : > { %v709_v19 = vpop.f32.mrf.mxu2  ;;  %2500 = vrot.lane.b32.xlu2 %v3585_v27, %s3184_s18 }
 0x16c   : > { %v728_v20 = vadd.f32 %v709_v19, %v640_v55  ;;  %v722_v21 = vpop.f32.mrf.mxu3  ;;  %v1707_v33 = vpop.permute.xlu1 %1706 }
 0x16d   : > { %v729_v23 = vadd.f32 %v722_v21, %v641_v58  ;;  %v784_v24 = vpop.f32.mrf.mxu1  ;;  %v1713_v61 = vsel %vm1710_vm3, %v1705_v26, %v1707_v33  ;;  %v1714_v3 = vsel %vm1710_vm3, %v1707_v33, %v1709_v39 }
 0x16e   : > { %v683_v28 = vpop.f32.mrf.mxu0  ;;  %v815_v29 = vadd.f32 %v784_v24, %v727_v62  ;;  %v1725_v7 = vsel %vm338_vm1, %v1713_v61, 0  ;;  %v1728_v8 = vsel %vm338_vm1, %v1714_v3, 0 }
 0x16f   : > { %v726_v31 = vadd.f32 %v683_v28, %v638_v0  ;;  %v1789_v0 = vpop.permute.xlu2 %1788 }
 0x170   : > { %2879 = vmatmul.msk.bf16.vlgmr.msrb.gmra.mxu1 %vm334_vm2, %v2877_v25  ;;  %2492 = vrot.lane.b32.xlu0 %v3302_v4, %s3184_s18 }
 0x171   : > { %2873 = vmatmul.msk.bf16.vlgmr.msra.gmra.mxu0 %vm334_vm2, %v2872_v60  ;;  %1662 = vmatpush.bf16.msrb.mxu1 %v1634_v30  ;;  %v1631_v60 = vsel %vm338_vm1, %v1623_v50, 0 }
 0x172   : > { %1561 = vmatpush.bf16.msra.mxu0 %v1543_v32  ;;  %2498 = vrot.lane.b32.xlu1 %v3721_v34, %s3184_s18  ;;  %v1795_v58 = vpop.permute.xlu0 %1794 }
 0x173   : > { %v711_v35 = vpop.f32.mrf.mxu2  ;;  %2584 = vrot.lane.b32.xlu2 %v3304_v5, %s3185_s30  ;;  %v1801_v24 = vsel %vm1798_vm4, %v1793_v54, %v1795_v58 }
 0x174   : > { %v724_v37 = vpop.f32.mrf.mxu3  ;;  %v1703_v45 = vpop.permute.xlu1 %1702  ;;  %v1813_v30 = vsel %vm338_vm1, %v1801_v24, 0 }
 0x175   : > { %v786_v40 = vpop.f32.mrf.mxu1  ;;  %v1712_v47 = vsel %vm1710_vm3, %v1703_v45, %v1705_v26  ;;  %v1711_v13 = vsel %vm1710_vm3, %v1701_v41, %v1703_v45  ;;  %v2892_v41 = vld [vmem:[%s3993_s2 + $0x40] sm:$0xf] }
 0x176   : > { %v685_v42 = vpop.f32.mrf.mxu0  ;;  %v1722_v57 = vsel %vm338_vm1, %v1712_v47, 0  ;;  %v1719_v21 = vsel %vm338_vm1, %v1711_v13, 0 }
 0x177   : > { %v1883_v6 = vpop.permute.xlu2 %1882 }
 0x178   : > { %2880 = vmatmul.msk.bf16.vlgmr.msrb.gmra.mxu2 %vm334_vm2, %v2877_v25  ;;  %2586 = vrot.lane.b32.xlu0 %v3721_v34, %s3185_s30 }
 0x179   : > { %2881 = vmatmul.msk.bf16.vlgmr.msrb.gmra.mxu3 %vm334_vm2, %v2877_v25  ;;  %1675 = vmatpush.bf16.msrb.mxu2 %v1637_v43 }
 0x17a   : > { %1688 = vmatpush.bf16.msrb.mxu3 %v1640_v44  ;;  %2494 = vrot.lane.b32.xlu1 %v3297_v2, %s3184_s18  ;;  %v1791_v9 = vpop.permute.xlu0 %1790 }
 0x17b   : > { %v797_v46 = vpop.f32.mrf.mxu2  ;;  %2580 = vrot.lane.b32.xlu2 %v3302_v4, %s3185_s30  ;;  %v1800_v11 = vsel %vm1798_vm4, %v1791_v9, %v1793_v54  ;;  %v1799_v38 = vsel %vm1798_vm4, %v1789_v0, %v1791_v9 }
 0x17c   : > { %v816_v48 = vadd.f32 %v797_v46, %v728_v20  ;;  %v810_v49 = vpop.f32.mrf.mxu3  ;;  %v1810_v19 = vsel %vm338_vm1, %v1800_v11, 0  ;;  %v1807_v47 = vsel %vm338_vm1, %v1799_v38, 0 }
 0x17d   : > { %v817_v51 = vadd.f32 %v810_v49, %v729_v23  ;;  %v872_v52 = vpop.f32.mrf.mxu1 }
 0x17e   : > { %v771_v55 = vpop.f32.mrf.mxu0  ;;  %v903_v56 = vadd.f32 %v872_v52, %v815_v29 }
 0x17f   : > { %v814_v59 = vadd.f32 %v771_v55, %v726_v31  ;;  %v1879_v34 = vpop.permute.xlu2 %1878 }
 0x180   : > { %2884 = vmatmul.msk.bf16.vlgmr.msra.gmra.mxu1 %vm334_vm2, %v2882_v53  ;;  %2582 = vrot.lane.b32.xlu0 %v3297_v2, %s3185_s30 }
 0x181   : > { %2878 = vmatmul.msk.bf16.vlgmr.msrb.gmra.mxu0 %vm334_vm2, %v2877_v25  ;;  %1750 = vmatpush.bf16.msra.mxu1 %v1722_v57 }
 0x182   : > { %1649 = vmatpush.bf16.msrb.mxu0 %v1631_v60  ;;  %2588 = vrot.lane.b32.xlu1 %v3585_v27, %s3185_s30  ;;  %v1797_v27 = vpop.permute.xlu1 %1796  ;;  %v1885_v31 = vpop.permute.xlu0 %1884 }
 0x183   : > { %v799_v5 = vpop.f32.mrf.mxu2  ;;  %v1802_v26 = vsel %vm1798_vm4, %v1795_v58, %v1797_v27  ;;  %v1890_v52 = vsel %vm1886_vm5, %v1883_v6, %v1885_v31 }
 0x184   : > { %v812_v62 = vpop.f32.mrf.mxu3  ;;  %v1816_v32 = vsel %vm338_vm1, %v1802_v26, 0  ;;  %v1904_v58 = vsel %vm338_vm1, %v1890_v52, 0 }
 0x185   : > { %v874_v63 = vpop.f32.mrf.mxu1 }
 0x186   : > { %v773_v1 = vpop.f32.mrf.mxu0 }
 0x187   : > { %v2897_v1 = vld [vmem:[%s3993_s2 + $0x44] sm:$0xf] }
 0x188   : > { %2885 = vmatmul.msk.bf16.vlgmr.msra.gmra.mxu2 %vm334_vm2, %v2882_v53 }
 0x189   : > { %2886 = vmatmul.msk.bf16.vlgmr.msra.gmra.mxu3 %vm334_vm2, %v2882_v53  ;;  %1763 = vmatpush.bf16.msra.mxu2 %v1725_v7 }
 0x18a   : > { %1776 = vmatpush.bf16.msra.mxu3 %v1728_v8  ;;  %v1881_v22 = vpop.permute.xlu1 %1880  ;;  %v1969_v45 = vpop.permute.xlu0 %1968 }
 0x18b   : > { %v885_v10 = vpop.f32.mrf.mxu2  ;;  %v1888_v36 = vsel %vm1886_vm5, %v1879_v34, %v1881_v22  ;;  %v1889_v50 = vsel %vm1886_vm5, %v1881_v22, %v1883_v6 }
 0x18c   : > { %v904_v4 = vadd.f32 %v885_v10, %v816_v48  ;;  %v898_v12 = vpop.f32.mrf.mxu3  ;;  %v1898_v44 = vsel %vm338_vm1, %v1888_v36, 0 }
 0x18d   : > { %v905_v14 = vadd.f32 %v898_v12, %v817_v51  ;;  %v960_v15 = vpop.f32.mrf.mxu1 }
 0x18e   : > { %v859_v17 = vpop.f32.mrf.mxu0  ;;  %v991_v18 = vadd.f32 %v960_v15, %v903_v56  ;;  %v1901_v56 = vsel %vm338_vm1, %v1889_v50, 0 }
 0x18f   : > { %v902_v20 = vadd.f32 %v859_v17, %v814_v59 }
 0x190   : > { %2889 = vmatmul.msk.bf16.vlgmr.msrb.gmra.mxu1 %vm334_vm2, %v2887_v16 }
 0x191   : > { %2883 = vmatmul.msk.bf16.vlgmr.msra.gmra.mxu0 %vm334_vm2, %v2882_v53  ;;  %1838 = vmatpush.bf16.msrb.mxu1 %v1810_v19  ;;  %v1973_v53 = vpop.permute.xlu2 %1972 }
 0x192   : > { %1737 = vmatpush.bf16.msra.mxu0 %v1719_v21  ;;  %v1877_v33 = vpop.permute.xlu1 %1876  ;;  %v1965_v57 = vpop.permute.xlu0 %1964 }
 0x193   : > { %v887_v23 = vpop.f32.mrf.mxu2  ;;  %v1887_v3 = vsel %vm1886_vm5, %v1877_v33, %v1879_v34 }
 0x194   : > { %v900_v25 = vpop.f32.mrf.mxu3 }
 0x195   : > { %v962_v28 = vpop.f32.mrf.mxu1 }
 0x196   : > { %v861_v29 = vpop.f32.mrf.mxu0 }
 0x198   : > { %2890 = vmatmul.msk.bf16.vlgmr.msrb.gmra.mxu2 %vm334_vm2, %v2887_v16 }
 0x199   : > { %2891 = vmatmul.msk.bf16.vlgmr.msrb.gmra.mxu3 %vm334_vm2, %v2887_v16  ;;  %1851 = vmatpush.bf16.msrb.mxu2 %v1813_v30  ;;  %v2057_v7 = vpop.permute.xlu2 %2056  ;;  %v2902_v30 = vld [vmem:[%s3993_s2 + $0x48] sm:$0xf] }
 0x19a   : > { %1864 = vmatpush.bf16.msrb.mxu3 %v1816_v32  ;;  %v1971_v48 = vpop.permute.xlu1 %1970  ;;  %v2059_v10 = vpop.permute.xlu0 %2058 }
 0x19b   : > { %v973_v35 = vpop.f32.mrf.mxu2  ;;  %v1977_v13 = vsel %vm1974_vm6, %v1969_v45, %v1971_v48  ;;  %v1978_v15 = vsel %vm1974_vm6, %v1971_v48, %v1973_v53  ;;  %v2065_v38 = vsel %vm2062_vm7, %v2057_v7, %v2059_v10 }
 0x19c   : > { %v992_v2 = vadd.f32 %v973_v35, %v904_v4  ;;  %v986_v37 = vpop.f32.mrf.mxu3  ;;  %v1895_v4 = vsel %vm338_vm1, %v1887_v3, 0  ;;  %v1989_v19 = vsel %vm338_vm1, %v1977_v13, 0  ;;  %v1992_v6 = vsel %vm338_vm1, %v1978_v15, 0 }
 0x19d   : > { %v993_v39 = vadd.f32 %v986_v37, %v905_v14  ;;  %v1048_v40 = vpop.f32.mrf.mxu1 }
 0x19e   : > { %v947_v42 = vpop.f32.mrf.mxu0  ;;  %v1079_v43 = vadd.f32 %v1048_v40, %v991_v18 }
 0x19f   : > { %v990_v46 = vadd.f32 %v947_v42, %v902_v20 }
 0x1a0   : > { %2894 = vmatmul.msk.bf16.vlgmr.msra.gmra.mxu1 %vm334_vm2, %v2892_v41 }
 0x1a1   : > { %2888 = vmatmul.msk.bf16.vlgmr.msrb.gmra.mxu0 %vm334_vm2, %v2887_v16  ;;  %1926 = vmatpush.bf16.msra.mxu1 %v1898_v44  ;;  %v2053_v17 = vpop.permute.xlu2 %2052  ;;  %v2077_v44 = vsel %vm338_vm1, %v2065_v38, 0 }
 0x1a2   : > { %1825 = vmatpush.bf16.msrb.mxu0 %v1807_v47  ;;  %v1967_v59 = vpop.permute.xlu1 %1966  ;;  %v2055_v21 = vpop.permute.xlu0 %2054 }
 0x1a3   : > { %v975_v49 = vpop.f32.mrf.mxu2  ;;  %v1976_v5 = vsel %vm1974_vm6, %v1967_v59, %v1969_v45  ;;  %v2064_v23 = vsel %vm2062_vm7, %v2055_v21, %v2057_v7  ;;  %v1975_v26 = vsel %vm1974_vm6, %v1965_v57, %v1967_v59  ;;  %v2063_v52 = vsel %vm2062_vm7, %v2053_v17, %v2055_v21 }
 0x1a4   : > { %v988_v51 = vpop.f32.mrf.mxu3  ;;  %v1986_v9 = vsel %vm338_vm1, %v1976_v5, 0  ;;  %v2074_v33 = vsel %vm338_vm1, %v2064_v23, 0  ;;  %v1983_v36 = vsel %vm338_vm1, %v1975_v26, 0  ;;  %v2071_v5 = vsel %vm338_vm1, %v2063_v52, 0 }
 0x1a5   : > { %v1050_v54 = vpop.f32.mrf.mxu1 }
 0x1a6   : > { %v949_v55 = vpop.f32.mrf.mxu0 }
 0x1a7   : > { %v2907_v55 = vld [vmem:[%s3993_s2 + $0x4c] sm:$0xf] }
 0x1a8   : > { %2895 = vmatmul.msk.bf16.vlgmr.msra.gmra.mxu2 %vm334_vm2, %v2892_v41 }
 0x1a9   : > { %2896 = vmatmul.msk.bf16.vlgmr.msra.gmra.mxu3 %vm334_vm2, %v2892_v41  ;;  %1939 = vmatpush.bf16.msra.mxu2 %v1901_v56  ;;  %v2147_v34 = vpop.permute.xlu2 %2146 }
 0x1aa   : > { %1952 = vmatpush.bf16.msra.mxu3 %v1904_v58  ;;  %v2061_v20 = vpop.permute.xlu1 %2060 }
 0x1ab   : > { %v1061_v60 = vpop.f32.mrf.mxu2  ;;  %v2066_v40 = vsel %vm2062_vm7, %v2059_v10, %v2061_v20 }
 0x1ac   : > { %v1080_v61 = vadd.f32 %v1061_v60, %v992_v2  ;;  %v1074_v62 = vpop.f32.mrf.mxu3  ;;  %v2080_v45 = vsel %vm338_vm1, %v2066_v40, 0 }
 0x1ad   : > { %v1081_v63 = vadd.f32 %v1074_v62, %v993_v39  ;;  %v1136_v0 = vpop.f32.mrf.mxu1 }
 0x1ae   : > { %v1035_v8 = vpop.f32.mrf.mxu0  ;;  %v1167_v27 = vadd.f32 %v1136_v0, %v1079_v43 }
 0x1af   : > { %v1078_v11 = vadd.f32 %v1035_v8, %v990_v46 }
 0x1b0   : > { %2899 = vmatmul.msk.bf16.vlgmr.msrb.gmra.mxu1 %vm334_vm2, %v2897_v1 }
 0x1b1   : > { %2893 = vmatmul.msk.bf16.vlgmr.msra.gmra.mxu0 %vm334_vm2, %v2892_v41  ;;  %2014 = vmatpush.bf16.msrb.mxu1 %v1986_v9  ;;  %v2149_v41 = vpop.permute.xlu0 %2148  ;;  %v2143_v47 = vpop.permute.xlu2 %2142 }
 0x1b2   : > { %1913 = vmatpush.bf16.msra.mxu0 %v1895_v4  ;;  %v2145_v2 = vpop.permute.xlu1 %2144  ;;  %v2154_v0 = vsel %vm2150_vm8, %v2147_v34, %v2149_v41 }
 0x1b3   : > { %v1063_v12 = vpop.f32.mrf.mxu2  ;;  %v2152_v49 = vsel %vm2150_vm8, %v2143_v47, %v2145_v2  ;;  %v2153_v3 = vsel %vm2150_vm8, %v2145_v2, %v2147_v34  ;;  %v2168_v10 = vsel %vm338_vm1, %v2154_v0, 0 }
 0x1b4   : > { %v1076_v14 = vpop.f32.mrf.mxu3  ;;  %v2162_v59 = vsel %vm338_vm1, %v2152_v49, 0  ;;  %v2165_v9 = vsel %vm338_vm1, %v2153_v3, 0 }
 0x1b5   : > { %v1138_v16 = vpop.f32.mrf.mxu1 }
 0x1b6   : > { %v1037_v18 = vpop.f32.mrf.mxu0 }
 0x1b7   : > { %v2912_v18 = vld [vmem:[%s3993_s2 + $0x50] sm:$0xf] }
 0x1b8   : > { %2900 = vmatmul.msk.bf16.vlgmr.msrb.gmra.mxu2 %vm334_vm2, %v2897_v1 }
 0x1b9   : > { %2901 = vmatmul.msk.bf16.vlgmr.msrb.gmra.mxu3 %vm334_vm2, %v2897_v1  ;;  %2027 = vmatpush.bf16.msrb.mxu2 %v1989_v19  ;;  %v2233_v56 = vpop.permute.xlu0 %2232 }
 0x1ba   : > { %2040 = vmatpush.bf16.msrb.mxu3 %v1992_v6  ;;  %v2141_v46 = vpop.permute.xlu1 %2140 }
 0x1bb   : > { %v1149_v22 = vpop.f32.mrf.mxu2  ;;  %v2151_v15 = vsel %vm2150_vm8, %v2141_v46, %v2143_v47 }
 0x1bc   : > { %v1168_v24 = vadd.f32 %v1149_v22, %v1080_v61  ;;  %v1162_v25 = vpop.f32.mrf.mxu3 }
 0x1bd   : > { %v1169_v28 = vadd.f32 %v1162_v25, %v1081_v63  ;;  %v1224_v29 = vpop.f32.mrf.mxu1 }
 0x1be   : > { %v1123_v31 = vpop.f32.mrf.mxu0  ;;  %v1255_v32 = vadd.f32 %v1224_v29, %v1167_v27 }
 0x1bf   : > { %v1166_v35 = vadd.f32 %v1123_v31, %v1078_v11 }
 0x1c0   : > { %2904 = vmatmul.msk.bf16.vlgmr.msra.gmra.mxu1 %vm334_vm2, %v2902_v30 }
 0x1c1   : > { %2898 = vmatmul.msk.bf16.vlgmr.msrb.gmra.mxu0 %vm334_vm2, %v2897_v1  ;;  %2102 = vmatpush.bf16.msra.mxu1 %v2074_v33  ;;  %v2237_v1 = vpop.permute.xlu2 %2236  ;;  %v2229_v8 = vpop.permute.xlu0 %2228 }
 0x1c2   : > { %2001 = vmatpush.bf16.msrb.mxu0 %v1983_v36  ;;  %v2235_v61 = vpop.permute.xlu1 %2234 }
 0x1c3   : > { %v1151_v37 = vpop.f32.mrf.mxu2  ;;  %v2241_v26 = vsel %vm2238_vm9, %v2233_v56, %v2235_v61  ;;  %v2242_v29 = vsel %vm2238_vm9, %v2235_v61, %v2237_v1 }
 0x1c4   : > { %v1164_v39 = vpop.f32.mrf.mxu3  ;;  %v2253_v33 = vsel %vm338_vm1, %v2241_v26, 0  ;;  %v2256_v34 = vsel %vm338_vm1, %v2242_v29, 0 }
 0x1c5   : > { %v1226_v42 = vpop.f32.mrf.mxu1 }
 0x1c6   : > { %v1125_v43 = vpop.f32.mrf.mxu0 }
 0x1c7   : > { %v2917_v43 = vld [vmem:[%s3993_s2 + $0x54] sm:$0xf] }
 0x1c8   : > { %2905 = vmatmul.msk.bf16.vlgmr.msra.gmra.mxu2 %vm334_vm2, %v2902_v30 }
 0x1c9   : > { %2906 = vmatmul.msk.bf16.vlgmr.msra.gmra.mxu3 %vm334_vm2, %v2902_v30  ;;  %2115 = vmatpush.bf16.msra.mxu2 %v2077_v44  ;;  %v2321_v19 = vpop.permute.xlu2 %2320  ;;  %v2323_v22 = vpop.permute.xlu0 %2322 }
 0x1ca   : > { %2128 = vmatpush.bf16.msra.mxu3 %v2080_v45  ;;  %v2231_v11 = vpop.permute.xlu1 %2230  ;;  %v2329_v52 = vsel %vm2326_vm10, %v2321_v19, %v2323_v22 }
 0x1cb   : > { %v1237_v48 = vpop.f32.mrf.mxu2  ;;  %v2240_v12 = vsel %vm2238_vm9, %v2231_v11, %v2233_v56  ;;  %v2239_v40 = vsel %vm2238_vm9, %v2229_v8, %v2231_v11  ;;  %v2922_v8 = vld [vmem:[%s3993_s2 + $0x58] sm:$0xf] }
 0x1cc   : > { %v1256_v50 = vadd.f32 %v1237_v48, %v1168_v24  ;;  %v1250_v51 = vpop.f32.mrf.mxu3  ;;  %v2250_v21 = vsel %vm338_vm1, %v2240_v12, 0  ;;  %v2159_v24 = vsel %vm338_vm1, %v2151_v15, 0  ;;  %v2247_v49 = vsel %vm338_vm1, %v2239_v40, 0 }
 0x1cd   : > { %v1257_v53 = vadd.f32 %v1250_v51, %v1169_v28  ;;  %v1312_v54 = vpop.f32.mrf.mxu1 }
 0x1ce   : > { %v1211_v57 = vpop.f32.mrf.mxu0  ;;  %v1343_v58 = vadd.f32 %v1312_v54, %v1255_v32 }
 0x1cf   : > { %v1254_v60 = vadd.f32 %v1211_v57, %v1166_v35 }
 0x1d0   : > { %2909 = vmatmul.msk.bf16.vlgmr.msrb.gmra.mxu1 %vm334_vm2, %v2907_v55 }
 0x1d1   : > { %2903 = vmatmul.msk.bf16.vlgmr.msra.gmra.mxu0 %vm334_vm2, %v2902_v30  ;;  %2190 = vmatpush.bf16.msrb.mxu1 %v2162_v59  ;;  %v2317_v31 = vpop.permute.xlu2 %2316  ;;  %v2319_v36 = vpop.permute.xlu0 %2318 }
 0x1d2   : > { %2089 = vmatpush.bf16.msra.mxu0 %v2071_v5  ;;  %v2325_v35 = vpop.permute.xlu1 %2324  ;;  %v2328_v37 = vsel %vm2326_vm10, %v2319_v36, %v2321_v19  ;;  %v2327_v0 = vsel %vm2326_vm10, %v2317_v31, %v2319_v36  ;;  %v2927_v31 = vld [vmem:[%s3993_s2 + $0x5c] sm:$0xf] }
 0x1d3   : > { %v1239_v62 = vpop.f32.mrf.mxu2  ;;  %v2338_v46 = vsel %vm338_vm1, %v2328_v37, 0  ;;  %v2330_v54 = vsel %vm2326_vm10, %v2323_v22, %v2325_v35  ;;  %v2335_v12 = vsel %vm338_vm1, %v2327_v0, 0 }
 0x1d4   : > { %v1252_v63 = vpop.f32.mrf.mxu3  ;;  %v2344_v59 = vsel %vm338_vm1, %v2330_v54, 0 }
 0x1d5   : > { %v1314_v7 = vpop.f32.mrf.mxu1 }
 0x1d6   : > { %v1213_v27 = vpop.f32.mrf.mxu0 }
 0x1d8   : > { %2910 = vmatmul.msk.bf16.vlgmr.msrb.gmra.mxu2 %vm334_vm2, %v2907_v55 }
 0x1d9   : > { %2911 = vmatmul.msk.bf16.vlgmr.msrb.gmra.mxu3 %vm334_vm2, %v2907_v55  ;;  %2203 = vmatpush.bf16.msrb.mxu2 %v2165_v9  ;;  %v2411_v47 = vpop.permute.xlu2 %2410 }
 0x1da   : > { %2216 = vmatpush.bf16.msrb.mxu3 %v2168_v10 }
 0x1db   : > { %v1325_v4 = vpop.f32.mrf.mxu2 }
 0x1dc   : > { %v1344_v13 = vadd.f32 %v1325_v4, %v1256_v50  ;;  %v1338_v14 = vpop.f32.mrf.mxu3  ;;  %v2409_v50 = vpop.permute.xlu1 %2408 }
 0x1dd   : > { %v1345_v16 = vadd.f32 %v1338_v14, %v1257_v53  ;;  %v1400_v17 = vpop.f32.mrf.mxu1  ;;  %v2417_v15 = vsel %vm2414_vm11, %v2409_v50, %v2411_v47 }
 0x1de   : > { %v1299_v6 = vpop.f32.mrf.mxu0  ;;  %v1431_v20 = vadd.f32 %v1400_v17, %v1343_v58  ;;  %v2341_v58 = vsel %vm338_vm1, %v2329_v52, 0 }
 0x1df   : > { %v1342_v23 = vadd.f32 %v1299_v6, %v1254_v60 }
 0x1e0   : > { %2914 = vmatmul.msk.bf16.vlgmr.msra.gmra.mxu1 %vm334_vm2, %v2912_v18 }
 0x1e1   : > { %2908 = vmatmul.msk.bf16.vlgmr.msrb.gmra.mxu0 %vm334_vm2, %v2907_v55  ;;  %2278 = vmatpush.bf16.msra.mxu1 %v2250_v21  ;;  %v2413_v55 = vpop.permute.xlu0 %2412  ;;  %v2407_v5 = vpop.permute.xlu2 %2406 }
 0x1e2   : > { %2177 = vmatpush.bf16.msrb.mxu0 %v2159_v24  ;;  %v2416_v62 = vsel %vm2414_vm11, %v2407_v5, %v2409_v50  ;;  %v2418_v17 = vsel %vm2414_vm11, %v2411_v47, %v2413_v55  ;;  %v2932_v55 = vld [vmem:[%s3993_s2 + $0x60] sm:$0xf] }
 0x1e3   : > { %v1327_v25 = vpop.f32.mrf.mxu2  ;;  %v2426_v11 = vsel %vm338_vm1, %v2416_v62, 0  ;;  %v2432_v21 = vsel %vm338_vm1, %v2418_v17, 0 }
 0x1e4   : > { %v1340_v28 = vpop.f32.mrf.mxu3  ;;  %v2405_v60 = vpop.permute.xlu1 %2404 }
 0x1e5   : > { %v1402_v30 = vpop.f32.mrf.mxu1  ;;  %v2415_v28 = vsel %vm2414_vm11, %v2405_v60, %v2407_v5 }
 0x1e6   : > { %v1301_v32 = vpop.f32.mrf.mxu0  ;;  %v2423_v37 = vsel %vm338_vm1, %v2415_v28, 0 }
 0x1e8   : > { %2915 = vmatmul.msk.bf16.vlgmr.msra.gmra.mxu2 %vm334_vm2, %v2912_v18 }
 0x1e9   : > { %2916 = vmatmul.msk.bf16.vlgmr.msra.gmra.mxu3 %vm334_vm2, %v2912_v18  ;;  %2291 = vmatpush.bf16.msra.mxu2 %v2253_v33  ;;  %v2497_v27 = vpop.permute.xlu0 %2496  ;;  %v2501_v32 = vpop.permute.xlu2 %2500 }
 0x1ea   : > { %2304 = vmatpush.bf16.msra.mxu3 %v2256_v34 }
 0x1eb   : > { %v1413_v2 = vpop.f32.mrf.mxu2 }
 0x1ec   : > { %v1432_v38 = vadd.f32 %v1413_v2, %v1344_v13  ;;  %v1426_v39 = vpop.f32.mrf.mxu3  ;;  %v2499_v13 = vpop.permute.xlu1 %2498 }
 0x1ed   : > { %v1433_v41 = vadd.f32 %v1426_v39, %v1345_v16  ;;  %v1488_v42 = vpop.f32.mrf.mxu1  ;;  %v2505_v39 = vsel %vm2502_vm12, %v2497_v27, %v2499_v13 }
 0x1ee   : > { %v1387_v44 = vpop.f32.mrf.mxu0  ;;  %v1519_v45 = vadd.f32 %v1488_v42, %v1431_v20  ;;  %v2429_v20 = vsel %vm338_vm1, %v2417_v15, 0  ;;  %v3186_v15 = vmov 0  }
 0x1ef   : > { %v1430_v48 = vadd.f32 %v1387_v44, %v1342_v23  ;;  %v2517_v44 = vsel %vm338_vm1, %v2505_v39, 0  ;;  %3061 = vset.pattern.permute.xlu1 %v3186_v15  ;;  %3062 = vset.pattern.permute.xlu0 %v3186_v15 }
 0x1f0   : > { %2919 = vmatmul.msk.bf16.vlgmr.msrb.gmra.mxu1 %vm334_vm2, %v2917_v43 }
 0x1f1   : > { %2913 = vmatmul.msk.bf16.vlgmr.msra.gmra.mxu0 %vm334_vm2, %v2912_v18  ;;  %2366 = vmatpush.bf16.msrb.mxu1 %v2338_v46  ;;  %v2493_v19 = vpop.permute.xlu0 %2492  ;;  %v2585_v46 = vpop.permute.xlu2 %2584 }
 0x1f2   : > { %2265 = vmatpush.bf16.msra.mxu0 %v2247_v49 }
 0x1f3   : > { %v1415_v51 = vpop.f32.mrf.mxu2 }
 0x1f4   : > { %v1428_v53 = vpop.f32.mrf.mxu3  ;;  %v2495_v22 = vpop.permute.xlu1 %2494 }
 0x1f5   : > { %v1490_v56 = vpop.f32.mrf.mxu1  ;;  %v2504_v24 = vsel %vm2502_vm12, %v2495_v22, %v2497_v27  ;;  %v2503_v52 = vsel %vm2502_vm12, %v2493_v19, %v2495_v22 }
 0x1f6   : > { %v1389_v57 = vpop.f32.mrf.mxu0  ;;  %v2514_v35 = vsel %vm338_vm1, %v2504_v24, 0  ;;  %v2511_v60 = vsel %vm338_vm1, %v2503_v52, 0 }
 0x1f8   : > { %2920 = vmatmul.msk.bf16.vlgmr.msrb.gmra.mxu2 %vm334_vm2, %v2917_v43 }
 0x1f9   : > { %2921 = vmatmul.msk.bf16.vlgmr.msrb.gmra.mxu3 %vm334_vm2, %v2917_v43  ;;  %2379 = vmatpush.bf16.msrb.mxu2 %v2341_v58  ;;  %v2587_v36 = vpop.permute.xlu0 %2586  ;;  %v2581_v27 = vpop.permute.xlu2 %2580 }
 0x1fa   : > { %2392 = vmatpush.bf16.msrb.mxu3 %v2344_v59  ;;  %v2593_v62 = vsel %vm2590_vm13, %v2585_v46, %v2587_v36 }
 0x1fb   : > { %v1501_v61 = vpop.f32.mrf.mxu2 }
 0x1fc   : > { %v1520_v3 = vadd.f32 %v1501_v61, %v1432_v38  ;;  %v1514_v63 = vpop.f32.mrf.mxu3  ;;  %v2589_v5 = vpop.permute.xlu1 %2588 }
 0x1fd   : > { %v1521_v1 = vadd.f32 %v1514_v63, %v1433_v41  ;;  %v1576_v7 = vpop.f32.mrf.mxu1  ;;  %v2506_v41 = vsel %vm2502_vm12, %v2499_v13, %v2501_v32  ;;  %v2594_v63 = vsel %vm2590_vm13, %v2587_v36, %v2589_v5 }
 0x1fe   : > { %v1475_v9 = vpop.f32.mrf.mxu0  ;;  %v1607_v10 = vadd.f32 %v1576_v7, %v1519_v45  ;;  %v2520_v45 = vsel %vm338_vm1, %v2506_v41, 0  ;;  %v2605_v7 = vsel %vm338_vm1, %v2593_v62, 0 }
 0x1ff   : > { %v1518_v4 = vadd.f32 %v1475_v9, %v1430_v48 }
 0x200   : > { %2924 = vmatmul.msk.bf16.vlgmr.msra.gmra.mxu1 %vm334_vm2, %v2922_v8 }
 0x201   : > { %2918 = vmatmul.msk.bf16.vlgmr.msrb.gmra.mxu0 %vm334_vm2, %v2917_v43  ;;  %2454 = vmatpush.bf16.msra.mxu1 %v2426_v11  ;;  %v2583_v47 = vpop.permute.xlu0 %2582 }
 0x202   : > { %2353 = vmatpush.bf16.msrb.mxu0 %v2335_v12  ;;  %v2592_v49 = vsel %vm2590_vm13, %v2583_v47, %v2585_v46 }
 0x203   : > { %v1503_v14 = vpop.f32.mrf.mxu2  ;;  %v2602_v58 = vsel %vm338_vm1, %v2592_v49, 0 }
 0x204   : > { %v1516_v16 = vpop.f32.mrf.mxu3  ;;  %v2937_v14 = vld [vmem:[%s3993_s2 + $0x64] sm:$0xf] }
 0x205   : > { %v1578_v18 = vpop.f32.mrf.mxu1  ;;  %v2666_v16 = vld [vmem:[%s3994_s3] sm:$0xff] }
 0x206   : > { %v1477_v6 = vpop.f32.mrf.mxu0  ;;  %2669 = vperm.xlu1 %3061, %v2666_v16  }
 0x208   : > { %2925 = vmatmul.msk.bf16.vlgmr.msra.gmra.mxu2 %vm334_vm2, %v2922_v8 }
 0x209   : > { %2926 = vmatmul.msk.bf16.vlgmr.msra.gmra.mxu3 %vm334_vm2, %v2922_v8  ;;  %2467 = vmatpush.bf16.msra.mxu2 %v2429_v20 }
 0x20a   : > { %2480 = vmatpush.bf16.msra.mxu3 %v2432_v21 }
 0x20b   : > { %v1589_v23 = vpop.f32.mrf.mxu2 }
 0x20c   : > { %v1608_v25 = vadd.f32 %v1589_v23, %v1520_v3  ;;  %v1602_v26 = vpop.f32.mrf.mxu3 }
 0x20d   : > { %v1609_v29 = vadd.f32 %v1602_v26, %v1521_v1  ;;  %v1664_v30 = vpop.f32.mrf.mxu1 }
 0x20e   : > { %v1563_v33 = vpop.f32.mrf.mxu0  ;;  %v1695_v34 = vadd.f32 %v1664_v30, %v1607_v10  ;;  %v2942_v30 = vld [vmem:[%s3993_s2 + $0x68] sm:$0xf] }
 0x20f   : > { %v1606_v2 = vadd.f32 %v1563_v33, %v1518_v4  ;;  %v2591_v4 = vsel %vm2590_vm13, %v2581_v27, %v2583_v47 }
 0x210   : > { %2929 = vmatmul.msk.bf16.vlgmr.msrb.gmra.mxu1 %vm334_vm2, %v2927_v31  ;;  %v2599_v6 = vsel %vm338_vm1, %v2591_v4, 0 }
 0x211   : > { %2923 = vmatmul.msk.bf16.vlgmr.msra.gmra.mxu0 %vm334_vm2, %v2922_v8  ;;  %2542 = vmatpush.bf16.msrb.mxu1 %v2514_v35  ;;  %v2608_v8 = vsel %vm338_vm1, %v2594_v63, 0 }
 0x212   : > { %2441 = vmatpush.bf16.msra.mxu0 %v2423_v37 }
 0x213   : > { %v1591_v38 = vpop.f32.mrf.mxu2 }
 0x214   : > { %v1604_v40 = vpop.f32.mrf.mxu3 }
 0x215   : > { %v1666_v42 = vpop.f32.mrf.mxu1 }
 0x216   : > { %v1565_v43 = vpop.f32.mrf.mxu0 }
 0x218   : > { %2930 = vmatmul.msk.bf16.vlgmr.msrb.gmra.mxu2 %vm334_vm2, %v2927_v31 }
 0x219   : > { %2931 = vmatmul.msk.bf16.vlgmr.msrb.gmra.mxu3 %vm334_vm2, %v2927_v31  ;;  %2555 = vmatpush.bf16.msrb.mxu2 %v2517_v44 }
 0x21a   : > { %2568 = vmatpush.bf16.msrb.mxu3 %v2520_v45 }
 0x21b   : > { %v1677_v48 = vpop.f32.mrf.mxu2 }
 0x21c   : > { %v1696_v50 = vadd.f32 %v1677_v48, %v1608_v25  ;;  %v1690_v51 = vpop.f32.mrf.mxu3 }
 0x21d   : > { %v1697_v53 = vadd.f32 %v1690_v51, %v1609_v29  ;;  %v1752_v54 = vpop.f32.mrf.mxu1 }
 0x21e   : > { %v1651_v56 = vpop.f32.mrf.mxu0  ;;  %v1783_v57 = vadd.f32 %v1752_v54, %v1695_v34 }
 0x21f   : > { %v1694_v59 = vadd.f32 %v1651_v56, %v1606_v2 }
 0x220   : > { %2934 = vmatmul.msk.bf16.vlgmr.msra.gmra.mxu1 %vm334_vm2, %v2932_v55 }
 0x221   : > { %2928 = vmatmul.msk.bf16.vlgmr.msrb.gmra.mxu0 %vm334_vm2, %v2927_v31  ;;  %2630 = vmatpush.bf16.msra.mxu1 %v2602_v58 }
 0x222   : > { %2529 = vmatpush.bf16.msrb.mxu0 %v2511_v60 }
 0x223   : > { %v1679_v61 = vpop.f32.mrf.mxu2 }
 0x224   : > { %v1692_v3 = vpop.f32.mrf.mxu3 }
 0x225   : > { %v1754_v0 = vpop.f32.mrf.mxu1 }
 0x226   : > { %v1653_v1 = vpop.f32.mrf.mxu0 }
 0x228   : > { %2935 = vmatmul.msk.bf16.vlgmr.msra.gmra.mxu2 %vm334_vm2, %v2932_v55 }
 0x229   : > { %2936 = vmatmul.msk.bf16.vlgmr.msra.gmra.mxu3 %vm334_vm2, %v2932_v55  ;;  %2643 = vmatpush.bf16.msra.mxu2 %v2605_v7 }
 0x22a   : > { %2656 = vmatpush.bf16.msra.mxu3 %v2608_v8 }
 0x22b   : > { %v1765_v9 = vpop.f32.mrf.mxu2 }
 0x22c   : > { %v1784_v10 = vadd.f32 %v1765_v9, %v1696_v50  ;;  %v1778_v11 = vpop.f32.mrf.mxu3 }
 0x22d   : > { %v1785_v12 = vadd.f32 %v1778_v11, %v1697_v53  ;;  %v1840_v13 = vpop.f32.mrf.mxu1 }
 0x22e   : > { %v1739_v17 = vpop.f32.mrf.mxu0  ;;  %v1871_v18 = vadd.f32 %v1840_v13, %v1783_v57 }
 0x22f   : > { %v1782_v19 = vadd.f32 %v1739_v17, %v1694_v59 }
 0x230   : > { %2939 = vmatmul.msk.bf16.vlgmr.msrb.gmra.mxu1 %vm334_vm2, %v2937_v14 }
 0x231   : > { %2933 = vmatmul.msk.bf16.vlgmr.msra.gmra.mxu0 %vm334_vm2, %v2932_v55 }
 0x232   : > { %2617 = vmatpush.bf16.msra.mxu0 %v2599_v6 }
 0x233   : > { %v1767_v20 = vpop.f32.mrf.mxu2 }
 0x234   : > { %v1780_v21 = vpop.f32.mrf.mxu3 }
 0x235   : > { %v1842_v22 = vpop.f32.mrf.mxu1 }
 0x236   : > { %v1741_v23 = vpop.f32.mrf.mxu0 }
 0x238   : > { %2940 = vmatmul.msk.bf16.vlgmr.msrb.gmra.mxu2 %vm334_vm2, %v2937_v14 }
 0x239   : > { %2941 = vmatmul.msk.bf16.vlgmr.msrb.gmra.mxu3 %vm334_vm2, %v2937_v14 }
 0x23b   : > { %v1853_v24 = vpop.f32.mrf.mxu2 }
 0x23c   : > { %v1872_v25 = vadd.f32 %v1853_v24, %v1784_v10  ;;  %v1866_v26 = vpop.f32.mrf.mxu3 }
 0x23d   : > { %v1873_v28 = vadd.f32 %v1866_v26, %v1785_v12  ;;  %v1928_v29 = vpop.f32.mrf.mxu1 }
 0x23e   : > { %v1827_v31 = vpop.f32.mrf.mxu0  ;;  %v1959_v32 = vadd.f32 %v1928_v29, %v1871_v18 }
 0x23f   : > { %v1870_v33 = vadd.f32 %v1827_v31, %v1782_v19 }
 0x240   : > { %2944 = vmatmul.msk.bf16.vlgmr.msra.gmra.mxu1 %vm334_vm2, %v2942_v30 }
 0x241   : > { %2938 = vmatmul.msk.bf16.vlgmr.msrb.gmra.mxu0 %vm334_vm2, %v2937_v14 }
 0x243   : > { %v1855_v34 = vpop.f32.mrf.mxu2 }
 0x244   : > { %v1868_v35 = vpop.f32.mrf.mxu3 }
 0x245   : > { %v1930_v36 = vpop.f32.mrf.mxu1 }
 0x246   : > { %v1829_v2 = vpop.f32.mrf.mxu0 }
 0x248   : > { %2945 = vmatmul.msk.bf16.vlgmr.msra.gmra.mxu2 %vm334_vm2, %v2942_v30 }
 0x249   : > { %2946 = vmatmul.msk.bf16.vlgmr.msra.gmra.mxu3 %vm334_vm2, %v2942_v30 }
 0x24b   : > { %v1941_v37 = vpop.f32.mrf.mxu2 }
 0x24c   : > { %v1960_v38 = vadd.f32 %v1941_v37, %v1872_v25  ;;  %v1954_v39 = vpop.f32.mrf.mxu3 }
 0x24d   : > { %v1961_v40 = vadd.f32 %v1954_v39, %v1873_v28  ;;  %v2016_v41 = vpop.f32.mrf.mxu1 }
 0x24e   : > { %v1915_v42 = vpop.f32.mrf.mxu0  ;;  %v2047_v43 = vadd.f32 %v2016_v41, %v1959_v32 }
 0x24f   : > { %v1958_v44 = vadd.f32 %v1915_v42, %v1870_v33 }
 0x251   : > { %2943 = vmatmul.msk.bf16.vlgmr.msra.gmra.mxu0 %vm334_vm2, %v2942_v30 }
 0x253   : > { %v1943_v45 = vpop.f32.mrf.mxu2 }
 0x254   : > { %v1956_v46 = vpop.f32.mrf.mxu3 }
 0x255   : > { %v2018_v47 = vpop.f32.mrf.mxu1 }
 0x256   : > { %v1917_v48 = vpop.f32.mrf.mxu0 }
 0x25b   : > { %v2029_v49 = vpop.f32.mrf.mxu2 }
 0x25c   : > { %v2048_v50 = vadd.f32 %v2029_v49, %v1960_v38  ;;  %v2042_v51 = vpop.f32.mrf.mxu3 }
 0x25d   : > { %v2049_v52 = vadd.f32 %v2042_v51, %v1961_v40  ;;  %v2104_v53 = vpop.f32.mrf.mxu1 }
 0x25e   : > { %v2003_v54 = vpop.f32.mrf.mxu0  ;;  %v2135_v55 = vadd.f32 %v2104_v53, %v2047_v43 }
 0x25f   : > { %v2046_v56 = vadd.f32 %v2003_v54, %v1958_v44 }
 0x263   : > { %v2031_v57 = vpop.f32.mrf.mxu2 }
 0x264   : > { %v2044_v58 = vpop.f32.mrf.mxu3 }
 0x265   : > { %v2106_v59 = vpop.f32.mrf.mxu1 }
 0x266   : > { %v2005_v60 = vpop.f32.mrf.mxu0 }
 0x26b   : > { %v2117_v5 = vpop.f32.mrf.mxu2 }
 0x26c   : > { %v2136_v61 = vadd.f32 %v2117_v5, %v2048_v50  ;;  %v2130_v62 = vpop.f32.mrf.mxu3 }
 0x26d   : > { %v2137_v3 = vadd.f32 %v2130_v62, %v2049_v52  ;;  %v2192_v63 = vpop.f32.mrf.mxu1 }
 0x26e   : > { %v2091_v0 = vpop.f32.mrf.mxu0  ;;  %v2223_v1 = vadd.f32 %v2192_v63, %v2135_v55 }
 0x26f   : > { %v2134_v7 = vadd.f32 %v2091_v0, %v2046_v56 }
 0x273   : > { %v2119_v8 = vpop.f32.mrf.mxu2 }
 0x274   : > { %v2132_v27 = vpop.f32.mrf.mxu3 }
 0x275   : > { %v2194_v9 = vpop.f32.mrf.mxu1 }
 0x276   : > { %v2093_v10 = vpop.f32.mrf.mxu0 }
 0x278   : > { %v2670_v51 = vpop.permute.xlu1 %2669 }
 0x27b   : > { %v2205_v11 = vpop.f32.mrf.mxu2 }
 0x27c   : > { %v2224_v4 = vadd.f32 %v2205_v11, %v2136_v61  ;;  %v2218_v12 = vpop.f32.mrf.mxu3 }
 0x27d   : > { %v2225_v13 = vadd.f32 %v2218_v12, %v2137_v3  ;;  %v2280_v14 = vpop.f32.mrf.mxu1 }
 0x27e   : > { %v2179_v15 = vpop.f32.mrf.mxu0  ;;  %v2311_v43 = vadd.f32 %v2280_v14, %v2223_v1 }
 0x27f   : > { %v2222_v16 = vadd.f32 %v2179_v15, %v2134_v7 }
 0x283   : > { %v2207_v17 = vpop.f32.mrf.mxu2 }
 0x284   : > { %v2220_v18 = vpop.f32.mrf.mxu3 }
 0x285   : > { %v2282_v19 = vpop.f32.mrf.mxu1 }
 0x286   : > { %v2181_v6 = vpop.f32.mrf.mxu0 }
 0x28b   : > { %v2293_v20 = vpop.f32.mrf.mxu2 }
 0x28c   : > { %v2306_v21 = vpop.f32.mrf.mxu3  ;;  %v2312_v57 = vadd.f32 %v2293_v20, %v2224_v4 }
 0x28d   : > { %v2368_v22 = vpop.f32.mrf.mxu1  ;;  %v2313_v59 = vadd.f32 %v2306_v21, %v2225_v13 }
 0x28e   : > { %v2267_v23 = vpop.f32.mrf.mxu0  ;;  %v2399_v45 = vadd.f32 %v2368_v22, %v2311_v43 }
 0x28f   : > { %v2310_v62 = vadd.f32 %v2267_v23, %v2222_v16 }
 0x293   : > { %v2295_v24 = vpop.f32.mrf.mxu2 }
 0x294   : > { %v2308_v25 = vpop.f32.mrf.mxu3 }
 0x295   : > { %v2370_v26 = vpop.f32.mrf.mxu1 }
 0x296   : > { %v2269_v28 = vpop.f32.mrf.mxu0 }
 0x29b   : > { %v2381_v29 = vpop.f32.mrf.mxu2 }
 0x29c   : > { %v2394_v30 = vpop.f32.mrf.mxu3  ;;  %v2400_v5 = vadd.f32 %v2381_v29, %v2312_v57 }
 0x29d   : > { %v2456_v31 = vpop.f32.mrf.mxu1  ;;  %v2401_v3 = vadd.f32 %v2394_v30, %v2313_v59 }
 0x29e   : > { %v2355_v32 = vpop.f32.mrf.mxu0  ;;  %v2487_v46 = vadd.f32 %v2456_v31, %v2399_v45 }
 0x29f   : > { %v2398_v0 = vadd.f32 %v2355_v32, %v2310_v62 }
 0x2a3   : > { %v2383_v33 = vpop.f32.mrf.mxu2 }
 0x2a4   : > { %v2396_v34 = vpop.f32.mrf.mxu3 }
 0x2a5   : > { %v2458_v35 = vpop.f32.mrf.mxu1 }
 0x2a6   : > { %v2357_v36 = vpop.f32.mrf.mxu0 }
 0x2ab   : > { %v2469_v2 = vpop.f32.mrf.mxu2 }
 0x2ac   : > { %v2482_v37 = vpop.f32.mrf.mxu3  ;;  %v2488_v63 = vadd.f32 %v2469_v2, %v2400_v5 }
 0x2ad   : > { %v2544_v38 = vpop.f32.mrf.mxu1  ;;  %v2489_v1 = vadd.f32 %v2482_v37, %v2401_v3 }
 0x2ae   : > { %v2443_v39 = vpop.f32.mrf.mxu0  ;;  %v2575_v48 = vadd.f32 %v2544_v38, %v2487_v46 }
 0x2af   : > { %v2486_v8 = vadd.f32 %v2443_v39, %v2398_v0 }
 0x2b3   : > { %v2471_v40 = vpop.f32.mrf.mxu2 }
 0x2b4   : > { %v2484_v41 = vpop.f32.mrf.mxu3 }
 0x2b5   : > { %v2546_v42 = vpop.f32.mrf.mxu1 }
 0x2b6   : > { %v2445_v44 = vpop.f32.mrf.mxu0 }
 0x2bb   : > { %v2557_v47 = vpop.f32.mrf.mxu2 }
 0x2bc   : > { %v2570_v49 = vpop.f32.mrf.mxu3  ;;  %v2576_v7 = vadd.f32 %v2557_v47, %v2488_v63 }
 0x2bd   : > { %v2632_v50 = vpop.f32.mrf.mxu1  ;;  %v2577_v27 = vadd.f32 %v2570_v49, %v2489_v1 }
 0x2be   : > { %v2531_v52 = vpop.f32.mrf.mxu0  ;;  %v2663_v53 = vadd.f32 %v2632_v50, %v2575_v48 }
 0x2bf   : > { %v2574_v4 = vadd.f32 %v2531_v52, %v2486_v8 }
 0x2c0   : > { %v2673_v54 = vadd.f32 %v2670_v51, %v2663_v53 }
 0x2c2   : > { %v2677_v55 = vmax.f32 %v2673_v54, 0.0 }
 0x2c3   : > { %v2559_v56 = vpop.f32.mrf.mxu2 }
 0x2c4   : > { %2681 = vst [vmem:[%s3939_s9 + $0x8] sm:$0xff] %v2677_v55  ;;  %v2572_v58 = vpop.f32.mrf.mxu3 }
 0x2c5   : > { %v2634_v60 = vpop.f32.mrf.mxu1 }
 0x2c6   : > { %v2533_v61 = vpop.f32.mrf.mxu0 }
 0x2cb   : > { %v2645_v9 = vpop.f32.mrf.mxu2 }
 0x2cc   : > { %v2664_v10 = vadd.f32 %v2645_v9, %v2576_v7  ;;  %v2658_v11 = vpop.f32.mrf.mxu3 }
 0x2cd   : > { %v2665_v12 = vadd.f32 %v2658_v11, %v2577_v27 }
 0x2ce   : > { %v2674_v13 = vadd.f32 %v2670_v51, %v2664_v10  ;;  %v2619_v14 = vpop.f32.mrf.mxu0 }
 0x2cf   : > { %v2675_v15 = vadd.f32 %v2670_v51, %v2665_v12  ;;  %v2662_v16 = vadd.f32 %v2619_v14, %v2574_v4 }
 0x2d0   : > { %v2678_v17 = vmax.f32 %v2674_v13, 0.0 }
 0x2d1   : > { %v2679_v18 = vmax.f32 %v2675_v15, 0.0  ;;  %v2672_v19 = vadd.f32 %v2670_v51, %v2662_v16 }
 0x2d2   : > { %2682 = vst [vmem:[%s3939_s9 + $0x10] sm:$0xff] %v2678_v17 }
 0x2d3   : > { %2683 = vst [vmem:[%s3939_s9 + $0x18] sm:$0xff] %v2679_v18  ;;  %v2676_v6 = vmax.f32 %v2672_v19, 0.0  ;;  %v2647_v20 = vpop.f32.mrf.mxu2 }
 0x2d4   : > { %v2660_v21 = vpop.f32.mrf.mxu3 }
 0x2d5   : > { %2680 = vst [vmem:[%s3939_s9] sm:$0xff] %v2676_v6 }
 0x2d6   : > { %v2621_v22 = vpop.f32.mrf.mxu0 }
 0x2d7   : > { %3091 = shalt.err (!%p3088_p9)
}
 0x2d8   : > { %2963 = dma.vmem_to_hbm [thread:$0]  (%p3263_p3), %s2701_s8, 512, %s2703_s14, %s2685_s23  }
 0x2d9 PF: > { %p2969_p10 = scmp.ge.s32.totalorder %s3158_s22, 2  ;;  %s2714_s5 = sand.u32 1, %s3130_s15  }
 0x2da   : > { %s2715_s9 = scalar_lea.sflag [#allocation3], %s2714_s5 }
 0x2db   : > { %p2966_p11 = pnand %p2969_p10, %p3272_p8 }
 0x2dd   : > { %p2967_p12 = pneg %p2966_p11 }
 0x2df   : > { %3125 = dma.done.wait (%p2967_p12), %s2715_s9, 512  }
 0x2e0   : > { %3127 = vsyncadd (%p2967_p12), %s2715_s9, 4294966784  ;;  %s17_s22 = sadd.s32 1, %s3158_s22   ;;  %s4000_s28 = sld [smem:[#allocation5_spill]] }
 0x2e1   : > { %p14_p13 = scmp.ge.s32.totalorder %s17_s22, 6   ;;  %s4001_s15 = smov %s3134_s16 }
 0x2e2   : > { %s4002_s16 = smov %s3138_s17  ;;  %s4003_s17 = smov %s3281_s7 }
 0x2e3   : > { %s4004_s18 = smov %s3150_s20  ;;  %s4005_s19 = smov %s3154_s21 }
 0x2e4   : > { %s4006_s20 = smov %s4009_s25  ;;  %16 = sbr.rel (!%p14_p13) target bundleno = 5 (0x5), region = 100 }
 0x2e6   : > { %s4007_s21 = smov %s4000_s28 }
 0x2e9   :  { %2721 = vsyncpa [#allocation3], 1 }
 0x2ea   :  { %2723 = vsyncpa [#allocation3 + $0x1], 1 }

</bundles_post_ra>
